<compile_context>
chip_gen: v6e
topology: v6e:2x2x1
jax: 0.10.0
libtpu: 0.0.40
codegen_flags: <defaults>
</compile_context>

<pallas_src>
import functools

import jax
import jax.numpy as jnp
from jax import lax
from jax.experimental import pallas as pl
from jax.experimental.pallas import tpu as pltpu

LEAK = 0.2
EPS = 1e-5
K = 7                       # both convs: kernel_size=7, stride=1, padding=3
PAD = (K - 1) // 2
C1, C2 = 64, 128            # channel widths of the two conv layers
MAX_ROWS = 8192             # cap on N*TILE_L rows fed to one MXU matmul


def _vmem_limit_bytes():
    """Generation-aware scoped-VMEM budget (~48 MiB on v7x, more on v5e/v6e)."""
    try:
        cap = pltpu.get_tpu_info().vmem_capacity_bytes
    except Exception:
        cap = 64 * 1024 * 1024
    return int(min(96 * 1024 * 1024, (cap * 3) // 4))


VMEM_LIMIT = _vmem_limit_bytes()


def _compiler_params():
    return pltpu.CompilerParams(
        dimension_semantics=("parallel",),
        vmem_limit_bytes=VMEM_LIMIT,
    )


def _pick_tile_l(length, batch):
    """Largest multiple-of-8 tile dividing L with N*TL <= MAX_ROWS; prefer >=2
    tiles so both v7x TensorCores get work."""
    single = None
    for cand in (2048, 1024, 512, 256, 128, 64, 32, 16, 8):
        if length % cand == 0 and batch * cand <= MAX_ROWS:
            if length // cand >= 2:
                return cand
            if single is None:
                single = cand
    return single if single is not None else length


def _pick_tile_c(length, batch):
    """Lane-dense tile for the transposed (NCL) output of pass C, or None."""
    for cand in (1024, 512, 256, 128):
        if length % cand == 0 and batch * cand <= MAX_ROWS:
            return cand
    if batch * length * C2 * 6 <= 24 * 1024 * 1024:
        return length               # single full-length tile (small L)
    return None                     # fall back to untransposed output


# --------------------------------------------------------------------------
# Pass A: conv1 (wrapper-side im2col) + per-tile BN1 partial sums.
# --------------------------------------------------------------------------
def _conv1_kernel(cols_ref, w_ref, h_ref, psum_ref, psumsq_ref):
    n, tl, kc = cols_ref.shape
    acc = jnp.dot(cols_ref[...].reshape(n * tl, kc), w_ref[...],
                  preferred_element_type=jnp.float32)
    h_ref[...] = acc.reshape(n, tl, -1).astype(h_ref.dtype)
    psum_ref[...] = jnp.sum(acc, axis=0).reshape(1, 1, -1)
    psumsq_ref[...] = jnp.sum(acc * acc, axis=0).reshape(1, 1, -1)


def _conv1(cols, w2d, tl):
    n, length, kc = cols.shape
    cout = w2d.shape[1]
    num_t = length // tl
    return pl.pallas_call(
        _conv1_kernel,
        grid=(num_t,),
        in_specs=[
            pl.BlockSpec((n, tl, kc), lambda t: (0, t, 0)),     # im2col columns
            pl.BlockSpec((kc, cout), lambda t: (0, 0)),          # weights, resident
        ],
        out_specs=(
            pl.BlockSpec((n, tl, cout), lambda t: (0, t, 0)),    # h1 (bf16)
            pl.BlockSpec((1, 1, cout), lambda t: (t, 0, 0)),     # per-tile sum
            pl.BlockSpec((1, 1, cout), lambda t: (t, 0, 0)),     # per-tile sumsq
        ),
        out_shape=(
            jax.ShapeDtypeStruct((n, length, cout), jnp.bfloat16),
            jax.ShapeDtypeStruct((num_t, 1, cout), jnp.float32),
            jax.ShapeDtypeStruct((num_t, 1, cout), jnp.float32),
        ),
        compiler_params=_compiler_params(),
    )(cols, w2d)


# --------------------------------------------------------------------------
# Pass B: BN1 affine + LeakyReLU fused with conv2 + per-tile BN2 partials.
# --------------------------------------------------------------------------
def _bn1_conv2_kernel(prev_ref, cur_ref, next_ref, scale_ref, shift_ref, w_ref,
                      h2_ref, psum_ref, psumsq_ref, *, seq_len):
    t = pl.program_id(0)
    n, tl, cin = cur_ref.shape
    cout = w_ref.shape[-1]

    # (TL + K - 1)-row halo window of h1 from the three auto-pipelined blocks.
    halo = jnp.concatenate(
        [prev_ref[:, 8 - PAD:, :], cur_ref[...], next_ref[:, :PAD, :]], axis=1)

    # BN1 affine + LeakyReLU (f32), then 'same' zero-padding of the activation:
    # zero rows whose original index falls outside [0, L) (also neutralizes the
    # clamped edge blocks).
    y = halo.astype(jnp.float32) * scale_ref[...] + shift_ref[...]
    act = jnp.maximum(y, LEAK * y)
    g = t * tl - PAD + lax.broadcasted_iota(jnp.int32, (1, tl + K - 1, 1), 1)
    act = jnp.where((g >= 0) & (g < seq_len), act, 0.0).astype(jnp.bfloat16)

    # conv2 as K accumulating bf16 MXU dots on shifted views (no im2col stage).
    acc = jnp.zeros((n * tl, cout), jnp.float32)
    for k in range(K):
        acc = acc + jnp.dot(act[:, k:k + tl, :].reshape(n * tl, cin), w_ref[k],
                            preferred_element_type=jnp.float32)

    h2_ref[...] = acc.reshape(n, tl, cout).astype(h2_ref.dtype)
    psum_ref[...] = jnp.sum(acc, axis=0).reshape(1, 1, -1)
    psumsq_ref[...] = jnp.sum(acc * acc, axis=0).reshape(1, 1, -1)


def _bn1_conv2(h1, scale, shift, w_taps, tl):
    n, length, cin = h1.shape
    cout = w_taps.shape[-1]
    num_t = length // tl
    r = tl // 8                       # tile length measured in 8-row blocks
    last8 = length // 8 - 1
    kernel = functools.partial(_bn1_conv2_kernel, seq_len=length)
    return pl.pallas_call(
        kernel,
        grid=(num_t,),
        in_specs=[
            # 8 rows just before the tile (clamped at the left edge; masked)
            pl.BlockSpec((n, 8, cin), lambda t: (0, jnp.maximum(t * r - 1, 0), 0)),
            # the tile itself
            pl.BlockSpec((n, tl, cin), lambda t: (0, t, 0)),
            # 8 rows just after the tile (clamped at the right edge; masked)
            pl.BlockSpec((n, 8, cin),
                         lambda t: (0, jnp.minimum((t + 1) * r, last8), 0)),
            pl.BlockSpec((1, 1, cin), lambda t: (0, 0, 0)),      # BN1 scale
            pl.BlockSpec((1, 1, cin), lambda t: (0, 0, 0)),      # BN1 shift
            pl.BlockSpec((K, cin, cout), lambda t: (0, 0, 0)),   # conv2 weights
        ],
        out_specs=(
            pl.BlockSpec((n, tl, cout), lambda t: (0, t, 0)),    # h2 (bf16)
            pl.BlockSpec((1, 1, cout), lambda t: (t, 0, 0)),
            pl.BlockSpec((1, 1, cout), lambda t: (t, 0, 0)),
        ),
        out_shape=(
            jax.ShapeDtypeStruct((n, length, cout), jnp.bfloat16),
            jax.ShapeDtypeStruct((num_t, 1, cout), jnp.float32),
            jax.ShapeDtypeStruct((num_t, 1, cout), jnp.float32),
        ),
        compiler_params=_compiler_params(),
    )(h1, h1, h1, scale, shift, w_taps)


# --------------------------------------------------------------------------
# Pass C: BN2 affine + LeakyReLU (+ fused NLC->NCL transpose).
# --------------------------------------------------------------------------
def _bn2_act_kernel(h_ref, scale_ref, shift_ref, o_ref, *, transpose):
    y = h_ref[...].astype(jnp.float32) * scale_ref[...] + shift_ref[...]
    act = jnp.maximum(y, LEAK * y)
    o_ref[...] = jnp.transpose(act, (0, 2, 1)) if transpose else act


def _bn2_act(h2, scale, shift, tl, transpose):
    n, length, c = h2.shape
    num_t = length // tl
    if transpose:
        out_spec = pl.BlockSpec((n, c, tl), lambda t: (0, 0, t))
        out_shape = jax.ShapeDtypeStruct((n, c, length), jnp.float32)
    else:
        out_spec = pl.BlockSpec((n, tl, c), lambda t: (0, t, 0))
        out_shape = jax.ShapeDtypeStruct((n, length, c), jnp.float32)
    kernel = functools.partial(_bn2_act_kernel, transpose=transpose)
    return pl.pallas_call(
        kernel,
        grid=(num_t,),
        in_specs=[
            pl.BlockSpec((n, tl, c), lambda t: (0, t, 0)),
            pl.BlockSpec((1, 1, c), lambda t: (0, 0, 0)),
            pl.BlockSpec((1, 1, c), lambda t: (0, 0, 0)),
        ],
        out_specs=out_spec,
        out_shape=out_shape,
        compiler_params=_compiler_params(),
    )(h2, scale, shift)


# --------------------------------------------------------------------------
# Wrapper / parameter handling
# --------------------------------------------------------------------------
def _bn_scale_shift(psum, psumsq, gamma, beta, count):
    """Fold per-tile partial sums into BN (training-mode) scale/shift."""
    s = jnp.sum(psum, axis=(0, 1))                     # (C,)
    ss = jnp.sum(psumsq, axis=(0, 1))                  # (C,)
    mean = s / count
    # TODO(synk): E[x^2]-E[x]^2 in f32 can cancel for very large N*L; a
    # Welford-style combine of the per-tile partials would be more robust.
    var = jnp.maximum(ss / count - mean * mean, 0.0)   # biased variance
    inv = lax.rsqrt(var + EPS)
    scale = gamma.astype(jnp.float32) * inv
    shift = beta.astype(jnp.float32) - mean * scale
    c = scale.shape[0]
    return scale.reshape(1, 1, c), shift.reshape(1, 1, c)


def _weight_taps(w_oik, dtype):
    # PyTorch (Cout, Cin, K) -> (K, Cin, Cout): one (Cin, Cout) matrix per tap.
    return jnp.transpose(w_oik, (2, 1, 0)).astype(dtype)


def init_params(in_dim, key):
    """Deterministic synthetic parameters (shapes match the PyTorch module)."""
    k1, k2, k3, k4 = jax.random.split(key, 4)
    return {
        # Conv1d(in_dim, 64, 7, 1, 3)
        "w1": 0.1 * jax.random.normal(k1, (C1, in_dim, K), jnp.float32),
        "b1": 0.1 * jax.random.normal(k2, (C1,), jnp.float32),
        # BatchNorm1d(64): PyTorch default init gamma=1, beta=0
        "g1": jnp.ones((C1,), jnp.float32),
        "beta1": jnp.zeros((C1,), jnp.float32),
        # Conv1d(64, 128, 7, 1, 3)
        "w2": 0.1 * jax.random.normal(k3, (C2, C1, K), jnp.float32),
        "b2": 0.1 * jax.random.normal(k4, (C2,), jnp.float32),
        # BatchNorm1d(128)
        "g2": jnp.ones((C2,), jnp.float32),
        "beta2": jnp.zeros((C2,), jnp.float32),
    }


@jax.jit
def conv_layer_forward(x_ncl, params):
    """Matches ConvLayer.forward: (N, in_dim, L) -> (N, 128, L).

    Conv biases b1/b2 cancel exactly under training-mode BatchNorm and are not
    used inside the kernels.
    """
    n, in_dim, length = x_ncl.shape
    # TODO(synk): lengths that are not a multiple of 8 would need a masked tail
    # tile; not handled here.
    assert length % 8 == 0, "sequence length must be a multiple of 8"
    tl = _pick_tile_l(length, n)
    count = jnp.float32(n * length)

    x_nlc = jnp.transpose(x_ncl, (0, 2, 1)).astype(jnp.float32)      # NCL -> NLC
    # conv1 im2col on the wrapper side (Cin is tiny, so 7x duplication is
    # cheap): folds the K taps into one lane-dense contraction of width K*Cin.
    xpad = jnp.pad(x_nlc, ((0, 0), (PAD, PAD), (0, 0)))
    cols1 = jnp.concatenate([xpad[:, k:k + length, :] for k in range(K)], axis=-1)

    w1 = _weight_taps(params["w1"], jnp.float32).reshape(K * in_dim, C1)
    w2 = _weight_taps(params["w2"], jnp.bfloat16)                    # (K, 64, 128)

    # layer 1: conv1 (+ BN1 partial stats); h1 stored bf16 in HBM
    h1, ps1, pss1 = _conv1(cols1, w1, tl)
    scale1, shift1 = _bn_scale_shift(ps1, pss1, params["g1"], params["beta1"], count)

    # layer 2: BN1 + LeakyReLU fused with conv2 (+ BN2 partial stats)
    h2, ps2, pss2 = _bn1_conv2(h1, scale1, shift1, w2, tl)
    scale2, shift2 = _bn_scale_shift(ps2, pss2, params["g2"], params["beta2"], count)

    # BN2 + LeakyReLU, fused with the NLC->NCL transpose whenever a lane-dense
    # output tiling exists (otherwise fall back to a wrapper-side transpose).
    tlc = _pick_tile_c(length, n)
    if tlc is not None:
        return _bn2_act(h2, scale2, shift2, tlc, transpose=True)
    out_nlc = _bn2_act(h2, scale2, shift2, tl, transpose=False)
    return jnp.transpose(out_nlc, (0, 2, 1))


def _reference_forward(x_ncl, params):
    """Pure-JAX reference (training-mode BN) for a correctness sanity check."""
    def conv1d(x, w, b):
        y = lax.conv_general_dilated(
            x, w, window_strides=(1,), padding=((PAD, PAD),),
            dimension_numbers=("NCH", "OIH", "NCH"))
        return y + b[None, :, None]

    def bn_lrelu(x, gamma, beta):
        mean = jnp.mean(x, axis=(0, 2), keepdims=True)
        var = jnp.mean((x - mean) ** 2, axis=(0, 2), keepdims=True)
        y = (x - mean) * lax.rsqrt(var + EPS)
        y = y * gamma[None, :, None] + beta[None, :, None]
        return jnp.where(y > 0, y, LEAK * y)

    h = conv1d(x_ncl, params["w1"], params["b1"])
    h = bn_lrelu(h, params["g1"], params["beta1"])
    h = conv1d(h, params["w2"], params["b2"])
    h = bn_lrelu(h, params["g2"], params["beta2"])
    return h


if __name__ == "__main__":
    key = jax.random.PRNGKey(0)
    kx, kp = jax.random.split(key)

    in_dim, N, L = 4, 2, 16
    x = jax.random.normal(kx, (N, in_dim, L), jnp.float32)           # NCL, like PyTorch
    params = init_params(in_dim, kp)

    out = conv_layer_forward(x, params)
    jax.block_until_ready(out)
    assert out.shape == (N, C2, L), out.shape
    assert out.dtype == jnp.float32

    # bf16 intermediates / conv2 operands -> relaxed (but still tight) tolerance.
    ref = _reference_forward(x, params)
    err = float(jnp.max(jnp.abs(out - ref)))
    assert jnp.allclose(out, ref, atol=5e-2, rtol=5e-2), err

    # TODO(synk): BatchNorm running_mean/running_var buffer updates (training
    # side effect that does not affect the returned activation) are not modeled.
    print("KERNEL_OK")
</pallas_src>

<mosaic_0001>
module attributes {stable_mosaic.version = 11 : i64} {
  func.func @_conv1_kernel(%arg0: i32, %arg1: memref<2x8x28xf32, #tpu.memory_space<vmem>>, %arg2: memref<28x64xf32, #tpu.memory_space<vmem>>, %arg3: memref<2x8x64xbf16, #tpu.memory_space<vmem>>, %arg4: memref<1x1x64xf32, #tpu.memory_space<vmem>>, %arg5: memref<1x1x64xf32, #tpu.memory_space<vmem>>) attributes {dimension_semantics = [#tpu.dimension_semantics<parallel>], iteration_bounds = array<i64: 2>, scalar_prefetch = 0 : i64, scratch_operands = 0 : i64, tpu.core_type = #tpu.core_type<tc>, window_params = [{transform_indices = @transform_0, window_bounds = array<i64: 2, 8, 28>}, {pipeline_mode = #tpu.pipeline_mode<synchronous>, transform_indices = @transform_1, window_bounds = array<i64: 28, 64>}, {transform_indices = @transform_2, window_bounds = array<i64: 2, 8, 64>}, {transform_indices = @transform_3, window_bounds = array<i64: 1, 1, 64>}, {transform_indices = @transform_4, window_bounds = array<i64: 1, 1, 64>}]} {
    %c0 = arith.constant 0 : index
    %c0_0 = arith.constant 0 : index
    %c0_1 = arith.constant 0 : index
    %0 = vector.load %arg1[%c0, %c0_0, %c0_1] : memref<2x8x28xf32, #tpu.memory_space<vmem>>, vector<2x8x28xf32>
    %1 = vector.shape_cast %0 : vector<2x8x28xf32> to vector<16x28xf32>
    %c0_2 = arith.constant 0 : index
    %c0_3 = arith.constant 0 : index
    %2 = vector.load %arg2[%c0_2, %c0_3] : memref<28x64xf32, #tpu.memory_space<vmem>>, vector<28x64xf32>
    %cst = arith.constant dense<0.000000e+00> : vector<16x64xf32>
    %3 = tpu.matmul %1, %2, %cst {dimension_numbers = #tpu.dot_dimension_numbers<[1], [0], [0], [1], [0, 0, 1, 1], [], []>} : vector<16x28xf32>, vector<28x64xf32>, vector<16x64xf32> -> vector<16x64xf32>
    %4 = vector.shape_cast %3 : vector<16x64xf32> to vector<2x8x64xf32>
    %5 = arith.truncf %4 : vector<2x8x64xf32> to vector<2x8x64xbf16>
    %c0_4 = arith.constant 0 : index
    %c0_5 = arith.constant 0 : index
    %c0_6 = arith.constant 0 : index
    %6 = vector.load %arg3[%c0_4, %c0_5, %c0_6] : memref<2x8x64xbf16, #tpu.memory_space<vmem>>, vector<2x8x64xbf16>
    tpu.vector_store %arg3[%c0_4, %c0_5, %c0_6], %5 {strides = array<i32>} : memref<2x8x64xbf16, #tpu.memory_space<vmem>>, vector<2x8x64xbf16>,
    %cst_7 = arith.constant dense<0.000000e+00> : vector<64xf32>
    %7 = vector.multi_reduction <add>, %3, %cst_7 [0] : vector<16x64xf32> to vector<64xf32>
    %8 = vector.shape_cast %7 : vector<64xf32> to vector<1x1x64xf32>
    %c0_8 = arith.constant 0 : index
    %c0_9 = arith.constant 0 : index
    %c0_10 = arith.constant 0 : index
    %9 = vector.load %arg4[%c0_8, %c0_9, %c0_10] : memref<1x1x64xf32, #tpu.memory_space<vmem>>, vector<1x1x64xf32>
    tpu.vector_store %arg4[%c0_8, %c0_9, %c0_10], %8 {strides = array<i32>} : memref<1x1x64xf32, #tpu.memory_space<vmem>>, vector<1x1x64xf32>,
    %10 = arith.mulf %3, %3 : vector<16x64xf32>
    %cst_11 = arith.constant dense<0.000000e+00> : vector<64xf32>
    %11 = vector.multi_reduction <add>, %10, %cst_11 [0] : vector<16x64xf32> to vector<64xf32>
    %12 = vector.shape_cast %11 : vector<64xf32> to vector<1x1x64xf32>
    %c0_12 = arith.constant 0 : index
    %c0_13 = arith.constant 0 : index
    %c0_14 = arith.constant 0 : index
    %13 = vector.load %arg5[%c0_12, %c0_13, %c0_14] : memref<1x1x64xf32, #tpu.memory_space<vmem>>, vector<1x1x64xf32>
    tpu.vector_store %arg5[%c0_12, %c0_13, %c0_14], %12 {strides = array<i32>} : memref<1x1x64xf32, #tpu.memory_space<vmem>>, vector<1x1x64xf32>,
    return
  }
  func.func @transform_0(%arg0: i32) -> (i32, i32, i32) {
    %c0_i32 = arith.constant 0 : i32
    %c0_i32_0 = arith.constant 0 : i32
    %c0_i32_1 = arith.constant 0 : i32
    return %c0_i32, %arg0, %c0_i32_0 : i32, i32, i32
  }
  func.func @transform_1(%arg0: i32) -> (i32, i32) {
    %c0_i32 = arith.constant 0 : i32
    %c0_i32_0 = arith.constant 0 : i32
    %c0_i32_1 = arith.constant 0 : i32
    return %c0_i32, %c0_i32_0 : i32, i32
  }
  func.func @transform_2(%arg0: i32) -> (i32, i32, i32) {
    %c0_i32 = arith.constant 0 : i32
    %c0_i32_0 = arith.constant 0 : i32
    %c0_i32_1 = arith.constant 0 : i32
    return %c0_i32, %arg0, %c0_i32_0 : i32, i32, i32
  }
  func.func @transform_3(%arg0: i32) -> (i32, i32, i32) {
    %c0_i32 = arith.constant 0 : i32
    %c0_i32_0 = arith.constant 0 : i32
    %c0_i32_1 = arith.constant 0 : i32
    return %arg0, %c0_i32, %c0_i32_0 : i32, i32, i32
  }
  func.func @transform_4(%arg0: i32) -> (i32, i32, i32) {
    %c0_i32 = arith.constant 0 : i32
    %c0_i32_0 = arith.constant 0 : i32
    %c0_i32_1 = arith.constant 0 : i32
    return %arg0, %c0_i32, %c0_i32_0 : i32, i32, i32
  }
}

module attributes {stable_mosaic.version = 11 : i64} {
  func.func @_bn2_act_kernel(%arg0: i32, %arg1: memref<2x16x128xbf16, #tpu.memory_space<vmem>>, %arg2: memref<1x1x128xf32, #tpu.memory_space<vmem>>, %arg3: memref<1x1x128xf32, #tpu.memory_space<vmem>>, %arg4: memref<2x128x16xf32, #tpu.memory_space<vmem>>) attributes {dimension_semantics = [#tpu.dimension_semantics<parallel>], iteration_bounds = array<i64: 1>, scalar_prefetch = 0 : i64, scratch_operands = 0 : i64, tpu.core_type = #tpu.core_type<tc>, window_params = [{transform_indices = @transform_0, window_bounds = array<i64: 2, 16, 128>}, {pipeline_mode = #tpu.pipeline_mode<synchronous>, transform_indices = @transform_1, window_bounds = array<i64: 1, 1, 128>}, {pipeline_mode = #tpu.pipeline_mode<synchronous>, transform_indices = @transform_2, window_bounds = array<i64: 1, 1, 128>}, {transform_indices = @transform_3, window_bounds = array<i64: 2, 128, 16>}]} {
    %c0 = arith.constant 0 : index
    %c0_0 = arith.constant 0 : index
    %c0_1 = arith.constant 0 : index
    %0 = vector.load %arg1[%c0, %c0_0, %c0_1] : memref<2x16x128xbf16, #tpu.memory_space<vmem>>, vector<2x16x128xbf16>
    %1 = arith.extf %0 : vector<2x16x128xbf16> to vector<2x16x128xf32>
    %c0_2 = arith.constant 0 : index
    %c0_3 = arith.constant 0 : index
    %c0_4 = arith.constant 0 : index
    %2 = vector.load %arg2[%c0_2, %c0_3, %c0_4] : memref<1x1x128xf32, #tpu.memory_space<vmem>>, vector<1x1x128xf32>
    %3 = vector.broadcast %2 : vector<1x1x128xf32> to vector<2x16x128xf32>
    %4 = arith.mulf %1, %3 : vector<2x16x128xf32>
    %c0_5 = arith.constant 0 : index
    %c0_6 = arith.constant 0 : index
    %c0_7 = arith.constant 0 : index
    %5 = vector.load %arg3[%c0_5, %c0_6, %c0_7] : memref<1x1x128xf32, #tpu.memory_space<vmem>>, vector<1x1x128xf32>
    %6 = vector.broadcast %5 : vector<1x1x128xf32> to vector<2x16x128xf32>
    %7 = arith.addf %4, %6 : vector<2x16x128xf32>
    %cst = arith.constant 2.000000e-01 : f32
    %8 = vector.broadcast %cst : f32 to vector<2x16x128xf32>
    %9 = arith.mulf %8, %7 : vector<2x16x128xf32>
    %10 = arith.maximumf %7, %9 : vector<2x16x128xf32>
    %11 = tpu.transpose %10, [0, 2, 1] : vector<2x16x128xf32> -> vector<2x128x16xf32>
    %c0_8 = arith.constant 0 : index
    %c0_9 = arith.constant 0 : index
    %c0_10 = arith.constant 0 : index
    %12 = vector.load %arg4[%c0_8, %c0_9, %c0_10] : memref<2x128x16xf32, #tpu.memory_space<vmem>>, vector<2x128x16xf32>
    tpu.vector_store %arg4[%c0_8, %c0_9, %c0_10], %11 {strides = array<i32>} : memref<2x128x16xf32, #tpu.memory_space<vmem>>, vector<2x128x16xf32>,
    return
  }
  func.func @transform_0(%arg0: i32) -> (i32, i32, i32) {
    %c0_i32 = arith.constant 0 : i32
    %c0_i32_0 = arith.constant 0 : i32
    %c0_i32_1 = arith.constant 0 : i32
    return %c0_i32, %arg0, %c0_i32_0 : i32, i32, i32
  }
  func.func @transform_1(%arg0: i32) -> (i32, i32, i32) {
    %c0_i32 = arith.constant 0 : i32
    %c0_i32_0 = arith.constant 0 : i32
    %c0_i32_1 = arith.constant 0 : i32
    %c0_i32_2 = arith.constant 0 : i32
    return %c0_i32, %c0_i32_0, %c0_i32_1 : i32, i32, i32
  }
  func.func @transform_2(%arg0: i32) -> (i32, i32, i32) {
    %c0_i32 = arith.constant 0 : i32
    %c0_i32_0 = arith.constant 0 : i32
    %c0_i32_1 = arith.constant 0 : i32
    %c0_i32_2 = arith.constant 0 : i32
    return %c0_i32, %c0_i32_0, %c0_i32_1 : i32, i32, i32
  }
  func.func @transform_3(%arg0: i32) -> (i32, i32, i32) {
    %c0_i32 = arith.constant 0 : i32
    %c0_i32_0 = arith.constant 0 : i32
    %c0_i32_1 = arith.constant 0 : i32
    return %c0_i32, %c0_i32_0, %arg0 : i32, i32, i32
  }
}

module attributes {stable_mosaic.version = 11 : i64} {
  func.func @_bn1_conv2_kernel(%arg0: i32, %arg1: memref<2x8x64xbf16, #tpu.memory_space<vmem>>, %arg2: memref<2x8x64xbf16, #tpu.memory_space<vmem>>, %arg3: memref<2x8x64xbf16, #tpu.memory_space<vmem>>, %arg4: memref<1x1x64xf32, #tpu.memory_space<vmem>>, %arg5: memref<1x1x64xf32, #tpu.memory_space<vmem>>, %arg6: memref<7x64x128xbf16, #tpu.memory_space<vmem>>, %arg7: memref<2x8x128xbf16, #tpu.memory_space<vmem>>, %arg8: memref<1x1x128xf32, #tpu.memory_space<vmem>>, %arg9: memref<1x1x128xf32, #tpu.memory_space<vmem>>) attributes {dimension_semantics = [#tpu.dimension_semantics<parallel>], iteration_bounds = array<i64: 2>, scalar_prefetch = 0 : i64, scratch_operands = 0 : i64, tpu.core_type = #tpu.core_type<tc>, window_params = [{transform_indices = @transform_0, window_bounds = array<i64: 2, 8, 64>}, {transform_indices = @transform_1, window_bounds = array<i64: 2, 8, 64>}, {transform_indices = @transform_2, window_bounds = array<i64: 2, 8, 64>}, {pipeline_mode = #tpu.pipeline_mode<synchronous>, transform_indices = @transform_3, window_bounds = array<i64: 1, 1, 64>}, {pipeline_mode = #tpu.pipeline_mode<synchronous>, transform_indices = @transform_4, window_bounds = array<i64: 1, 1, 64>}, {pipeline_mode = #tpu.pipeline_mode<synchronous>, transform_indices = @transform_5, window_bounds = array<i64: 7, 64, 128>}, {transform_indices = @transform_6, window_bounds = array<i64: 2, 8, 128>}, {transform_indices = @transform_7, window_bounds = array<i64: 1, 1, 128>}, {transform_indices = @transform_8, window_bounds = array<i64: 1, 1, 128>}]} {
    %c0 = arith.constant 0 : index
    %c5 = arith.constant 5 : index
    %c0_0 = arith.constant 0 : index
    %0 = vector.load %arg1[%c0, %c5, %c0_0] : memref<2x8x64xbf16, #tpu.memory_space<vmem>>, vector<2x3x64xbf16>
    %c0_1 = arith.constant 0 : index
    %c0_2 = arith.constant 0 : index
    %c0_3 = arith.constant 0 : index
    %1 = vector.load %arg2[%c0_1, %c0_2, %c0_3] : memref<2x8x64xbf16, #tpu.memory_space<vmem>>, vector<2x8x64xbf16>
    %c0_4 = arith.constant 0 : index
    %c0_5 = arith.constant 0 : index
    %c0_6 = arith.constant 0 : index
    %2 = vector.load %arg3[%c0_4, %c0_5, %c0_6] : memref<2x8x64xbf16, #tpu.memory_space<vmem>>, vector<2x3x64xbf16>
    %3 = tpu.concatenate %0, %1, %2 in 1 : vector<2x3x64xbf16>, vector<2x8x64xbf16>, vector<2x3x64xbf16> -> vector<2x14x64xbf16>
    %4 = arith.extf %3 : vector<2x14x64xbf16> to vector<2x14x64xf32>
    %c0_7 = arith.constant 0 : index
    %c0_8 = arith.constant 0 : index
    %c0_9 = arith.constant 0 : index
    %5 = vector.load %arg4[%c0_7, %c0_8, %c0_9] : memref<1x1x64xf32, #tpu.memory_space<vmem>>, vector<1x1x64xf32>
    %6 = vector.broadcast %5 : vector<1x1x64xf32> to vector<2x14x64xf32>
    %7 = arith.mulf %4, %6 : vector<2x14x64xf32>
    %c0_10 = arith.constant 0 : index
    %c0_11 = arith.constant 0 : index
    %c0_12 = arith.constant 0 : index
    %8 = vector.load %arg5[%c0_10, %c0_11, %c0_12] : memref<1x1x64xf32, #tpu.memory_space<vmem>>, vector<1x1x64xf32>
    %9 = vector.broadcast %8 : vector<1x1x64xf32> to vector<2x14x64xf32>
    %10 = arith.addf %7, %9 : vector<2x14x64xf32>
    %cst = arith.constant 2.000000e-01 : f32
    %11 = vector.broadcast %cst : f32 to vector<2x14x64xf32>
    %12 = arith.mulf %11, %10 : vector<2x14x64xf32>
    %13 = arith.maximumf %10, %12 : vector<2x14x64xf32>
    %c8_i32 = arith.constant 8 : i32
    %14 = arith.muli %arg0, %c8_i32 : i32
    %c3_i32 = arith.constant 3 : i32
    %15 = arith.subi %14, %c3_i32 : i32
    %16 = tpu.iota {dimensions = array<i32: 1>} : vector<1x14x1xi32>
    %17 = vector.broadcast %15 : i32 to vector<1x14x1xi32>
    %18 = arith.addi %17, %16 : vector<1x14x1xi32>
    %c0_i32 = arith.constant 0 : i32
    %19 = vector.broadcast %c0_i32 : i32 to vector<1x14x1xi32>
    %20 = arith.cmpi sge, %18, %19 : vector<1x14x1xi32>
    %c16_i32 = arith.constant 16 : i32
    %21 = vector.broadcast %c16_i32 : i32 to vector<1x14x1xi32>
    %22 = arith.cmpi slt, %18, %21 : vector<1x14x1xi32>
    %23 = arith.andi %20, %22 : vector<1x14x1xi1>
    %cst_13 = arith.constant 0.000000e+00 : f32
    %24 = vector.shape_cast %23 : vector<1x14x1xi1> to vector<1x14x1xi1>
    %25 = vector.broadcast %24 : vector<1x14x1xi1> to vector<2x14x64xi1>
    %26 = vector.broadcast %cst_13 : f32 to vector<2x14x64xf32>
    %27 = arith.select %25, %13, %26 : vector<2x14x64xi1>, vector<2x14x64xf32>
    %28 = arith.truncf %27 : vector<2x14x64xf32> to vector<2x14x64xbf16>
    %cst_14 = arith.constant 0.000000e+00 : f32
    %29 = vector.broadcast %cst_14 : f32 to vector<16x128xf32>
    %30 = vector.extract_strided_slice %28 {offsets = [0, 0, 0], sizes = [2, 8, 64], strides = [1, 1, 1]} : vector<2x14x64xbf16> to vector<2x8x64xbf16>
    %31 = vector.shape_cast %30 : vector<2x8x64xbf16> to vector<16x64xbf16>
    %c0_15 = arith.constant 0 : index
    %c0_16 = arith.constant 0 : index
    %c0_17 = arith.constant 0 : index
    %32 = vector.load %arg6[%c0_15, %c0_16, %c0_17] : memref<7x64x128xbf16, #tpu.memory_space<vmem>>, vector<1x64x128xbf16>
    %33 = vector.shape_cast %32 : vector<1x64x128xbf16> to vector<64x128xbf16>
    %cst_18 = arith.constant dense<0.000000e+00> : vector<16x128xf32>
    %34 = tpu.matmul %31, %33, %cst_18 {dimension_numbers = #tpu.dot_dimension_numbers<[1], [0], [0], [1], [0, 0, 1, 1], [], []>} : vector<16x64xbf16>, vector<64x128xbf16>, vector<16x128xf32> -> vector<16x128xf32>
    %35 = arith.addf %29, %34 : vector<16x128xf32>
    %36 = vector.extract_strided_slice %28 {offsets = [0, 1, 0], sizes = [2, 8, 64], strides = [1, 1, 1]} : vector<2x14x64xbf16> to vector<2x8x64xbf16>
    %37 = vector.shape_cast %36 : vector<2x8x64xbf16> to vector<16x64xbf16>
    %c1 = arith.constant 1 : index
    %c0_19 = arith.constant 0 : index
    %c0_20 = arith.constant 0 : index
    %38 = vector.load %arg6[%c1, %c0_19, %c0_20] : memref<7x64x128xbf16, #tpu.memory_space<vmem>>, vector<1x64x128xbf16>
    %39 = vector.shape_cast %38 : vector<1x64x128xbf16> to vector<64x128xbf16>
    %cst_21 = arith.constant dense<0.000000e+00> : vector<16x128xf32>
    %40 = tpu.matmul %37, %39, %cst_21 {dimension_numbers = #tpu.dot_dimension_numbers<[1], [0], [0], [1], [0, 0, 1, 1], [], []>} : vector<16x64xbf16>, vector<64x128xbf16>, vector<16x128xf32> -> vector<16x128xf32>
    %41 = arith.addf %35, %40 : vector<16x128xf32>
    %42 = vector.extract_strided_slice %28 {offsets = [0, 2, 0], sizes = [2, 8, 64], strides = [1, 1, 1]} : vector<2x14x64xbf16> to vector<2x8x64xbf16>
    %43 = vector.shape_cast %42 : vector<2x8x64xbf16> to vector<16x64xbf16>
    %c2 = arith.constant 2 : index
    %c0_22 = arith.constant 0 : index
    %c0_23 = arith.constant 0 : index
    %44 = vector.load %arg6[%c2, %c0_22, %c0_23] : memref<7x64x128xbf16, #tpu.memory_space<vmem>>, vector<1x64x128xbf16>
    %45 = vector.shape_cast %44 : vector<1x64x128xbf16> to vector<64x128xbf16>
    %cst_24 = arith.constant dense<0.000000e+00> : vector<16x128xf32>
    %46 = tpu.matmul %43, %45, %cst_24 {dimension_numbers = #tpu.dot_dimension_numbers<[1], [0], [0], [1], [0, 0, 1, 1], [], []>} : vector<16x64xbf16>, vector<64x128xbf16>, vector<16x128xf32> -> vector<16x128xf32>
    %47 = arith.addf %41, %46 : vector<16x128xf32>
    %48 = vector.extract_strided_slice %28 {offsets = [0, 3, 0], sizes = [2, 8, 64], strides = [1, 1, 1]} : vector<2x14x64xbf16> to vector<2x8x64xbf16>
    %49 = vector.shape_cast %48 : vector<2x8x64xbf16> to vector<16x64xbf16>
    %c3 = arith.constant 3 : index
    %c0_25 = arith.constant 0 : index
    %c0_26 = arith.constant 0 : index
    %50 = vector.load %arg6[%c3, %c0_25, %c0_26] : memref<7x64x128xbf16, #tpu.memory_space<vmem>>, vector<1x64x128xbf16>
    %51 = vector.shape_cast %50 : vector<1x64x128xbf16> to vector<64x128xbf16>
    %cst_27 = arith.constant dense<0.000000e+00> : vector<16x128xf32>
    %52 = tpu.matmul %49, %51, %cst_27 {dimension_numbers = #tpu.dot_dimension_numbers<[1], [0], [0], [1], [0, 0, 1, 1], [], []>} : vector<16x64xbf16>, vector<64x128xbf16>, vector<16x128xf32> -> vector<16x128xf32>
    %53 = arith.addf %47, %52 : vector<16x128xf32>
    %54 = vector.extract_strided_slice %28 {offsets = [0, 4, 0], sizes = [2, 8, 64], strides = [1, 1, 1]} : vector<2x14x64xbf16> to vector<2x8x64xbf16>
    %55 = vector.shape_cast %54 : vector<2x8x64xbf16> to vector<16x64xbf16>
    %c4 = arith.constant 4 : index
    %c0_28 = arith.constant 0 : index
    %c0_29 = arith.constant 0 : index
    %56 = vector.load %arg6[%c4, %c0_28, %c0_29] : memref<7x64x128xbf16, #tpu.memory_space<vmem>>, vector<1x64x128xbf16>
    %57 = vector.shape_cast %56 : vector<1x64x128xbf16> to vector<64x128xbf16>
    %cst_30 = arith.constant dense<0.000000e+00> : vector<16x128xf32>
    %58 = tpu.matmul %55, %57, %cst_30 {dimension_numbers = #tpu.dot_dimension_numbers<[1], [0], [0], [1], [0, 0, 1, 1], [], []>} : vector<16x64xbf16>, vector<64x128xbf16>, vector<16x128xf32> -> vector<16x128xf32>
    %59 = arith.addf %53, %58 : vector<16x128xf32>
    %60 = vector.extract_strided_slice %28 {offsets = [0, 5, 0], sizes = [2, 8, 64], strides = [1, 1, 1]} : vector<2x14x64xbf16> to vector<2x8x64xbf16>
    %61 = vector.shape_cast %60 : vector<2x8x64xbf16> to vector<16x64xbf16>
    %c5_31 = arith.constant 5 : index
    %c0_32 = arith.constant 0 : index
    %c0_33 = arith.constant 0 : index
    %62 = vector.load %arg6[%c5_31, %c0_32, %c0_33] : memref<7x64x128xbf16, #tpu.memory_space<vmem>>, vector<1x64x128xbf16>
    %63 = vector.shape_cast %62 : vector<1x64x128xbf16> to vector<64x128xbf16>
    %cst_34 = arith.constant dense<0.000000e+00> : vector<16x128xf32>
    %64 = tpu.matmul %61, %63, %cst_34 {dimension_numbers = #tpu.dot_dimension_numbers<[1], [0], [0], [1], [0, 0, 1, 1], [], []>} : vector<16x64xbf16>, vector<64x128xbf16>, vector<16x128xf32> -> vector<16x128xf32>
    %65 = arith.addf %59, %64 : vector<16x128xf32>
    %66 = vector.extract_strided_slice %28 {offsets = [0, 6, 0], sizes = [2, 8, 64], strides = [1, 1, 1]} : vector<2x14x64xbf16> to vector<2x8x64xbf16>
    %67 = vector.shape_cast %66 : vector<2x8x64xbf16> to vector<16x64xbf16>
    %c6 = arith.constant 6 : index
    %c0_35 = arith.constant 0 : index
    %c0_36 = arith.constant 0 : index
    %68 = vector.load %arg6[%c6, %c0_35, %c0_36] : memref<7x64x128xbf16, #tpu.memory_space<vmem>>, vector<1x64x128xbf16>
    %69 = vector.shape_cast %68 : vector<1x64x128xbf16> to vector<64x128xbf16>
    %cst_37 = arith.constant dense<0.000000e+00> : vector<16x128xf32>
    %70 = tpu.matmul %67, %69, %cst_37 {dimension_numbers = #tpu.dot_dimension_numbers<[1], [0], [0], [1], [0, 0, 1, 1], [], []>} : vector<16x64xbf16>, vector<64x128xbf16>, vector<16x128xf32> -> vector<16x128xf32>
    %71 = arith.addf %65, %70 : vector<16x128xf32>
    %72 = vector.shape_cast %71 : vector<16x128xf32> to vector<2x8x128xf32>
    %73 = arith.truncf %72 : vector<2x8x128xf32> to vector<2x8x128xbf16>
    %c0_38 = arith.constant 0 : index
    %c0_39 = arith.constant 0 : index
    %c0_40 = arith.constant 0 : index
    %74 = vector.load %arg7[%c0_38, %c0_39, %c0_40] : memref<2x8x128xbf16, #tpu.memory_space<vmem>>, vector<2x8x128xbf16>
    tpu.vector_store %arg7[%c0_38, %c0_39, %c0_40], %73 {strides = array<i32>} : memref<2x8x128xbf16, #tpu.memory_space<vmem>>, vector<2x8x128xbf16>,
    %cst_41 = arith.constant dense<0.000000e+00> : vector<128xf32>
    %75 = vector.multi_reduction <add>, %71, %cst_41 [0] : vector<16x128xf32> to vector<128xf32>
    %76 = vector.shape_cast %75 : vector<128xf32> to vector<1x1x128xf32>
    %c0_42 = arith.constant 0 : index
    %c0_43 = arith.constant 0 : index
    %c0_44 = arith.constant 0 : index
    %77 = vector.load %arg8[%c0_42, %c0_43, %c0_44] : memref<1x1x128xf32, #tpu.memory_space<vmem>>, vector<1x1x128xf32>
    tpu.vector_store %arg8[%c0_42, %c0_43, %c0_44], %76 {strides = array<i32>} : memref<1x1x128xf32, #tpu.memory_space<vmem>>, vector<1x1x128xf32>,
    %78 = arith.mulf %71, %71 : vector<16x128xf32>
    %cst_45 = arith.constant dense<0.000000e+00> : vector<128xf32>
    %79 = vector.multi_reduction <add>, %78, %cst_45 [0] : vector<16x128xf32> to vector<128xf32>
    %80 = vector.shape_cast %79 : vector<128xf32> to vector<1x1x128xf32>
    %c0_46 = arith.constant 0 : index
    %c0_47 = arith.constant 0 : index
    %c0_48 = arith.constant 0 : index
    %81 = vector.load %arg9[%c0_46, %c0_47, %c0_48] : memref<1x1x128xf32, #tpu.memory_space<vmem>>, vector<1x1x128xf32>
    tpu.vector_store %arg9[%c0_46, %c0_47, %c0_48], %80 {strides = array<i32>} : memref<1x1x128xf32, #tpu.memory_space<vmem>>, vector<1x1x128xf32>,
    return
  }
  func.func @transform_0(%arg0: i32) -> (i32, i32, i32) {
    %c1_i32 = arith.constant 1 : i32
    %0 = arith.muli %arg0, %c1_i32 : i32
    %c1_i32_0 = arith.constant 1 : i32
    %1 = arith.subi %0, %c1_i32_0 : i32
    %c0_i32 = arith.constant 0 : i32
    %2 = arith.maxsi %1, %c0_i32 : i32
    %c0_i32_1 = arith.constant 0 : i32
    %c0_i32_2 = arith.constant 0 : i32
    %c0_i32_3 = arith.constant 0 : i32
    return %c0_i32_1, %2, %c0_i32_2 : i32, i32, i32
  }
  func.func @transform_1(%arg0: i32) -> (i32, i32, i32) {
    %c0_i32 = arith.constant 0 : i32
    %c0_i32_0 = arith.constant 0 : i32
    %c0_i32_1 = arith.constant 0 : i32
    return %c0_i32, %arg0, %c0_i32_0 : i32, i32, i32
  }
  func.func @transform_2(%arg0: i32) -> (i32, i32, i32) {
    %c1_i32 = arith.constant 1 : i32
    %0 = arith.addi %arg0, %c1_i32 : i32
    %c1_i32_0 = arith.constant 1 : i32
    %1 = arith.muli %0, %c1_i32_0 : i32
    %c1_i32_1 = arith.constant 1 : i32
    %2 = arith.minsi %1, %c1_i32_1 : i32
    %c0_i32 = arith.constant 0 : i32
    %c0_i32_2 = arith.constant 0 : i32
    %c0_i32_3 = arith.constant 0 : i32
    return %c0_i32, %2, %c0_i32_2 : i32, i32, i32
  }
  func.func @transform_3(%arg0: i32) -> (i32, i32, i32) {
    %c0_i32 = arith.constant 0 : i32
    %c0_i32_0 = arith.constant 0 : i32
    %c0_i32_1 = arith.constant 0 : i32
    %c0_i32_2 = arith.constant 0 : i32
    return %c0_i32, %c0_i32_0, %c0_i32_1 : i32, i32, i32
  }
  func.func @transform_4(%arg0: i32) -> (i32, i32, i32) {
    %c0_i32 = arith.constant 0 : i32
    %c0_i32_0 = arith.constant 0 : i32
    %c0_i32_1 = arith.constant 0 : i32
    %c0_i32_2 = arith.constant 0 : i32
    return %c0_i32, %c0_i32_0, %c0_i32_1 : i32, i32, i32
  }
  func.func @transform_5(%arg0: i32) -> (i32, i32, i32) {
    %c0_i32 = arith.constant 0 : i32
    %c0_i32_0 = arith.constant 0 : i32
    %c0_i32_1 = arith.constant 0 : i32
    %c0_i32_2 = arith.constant 0 : i32
    return %c0_i32, %c0_i32_0, %c0_i32_1 : i32, i32, i32
  }
  func.func @transform_6(%arg0: i32) -> (i32, i32, i32) {
    %c0_i32 = arith.constant 0 : i32
    %c0_i32_0 = arith.constant 0 : i32
    %c0_i32_1 = arith.constant 0 : i32
    return %c0_i32, %arg0, %c0_i32_0 : i32, i32, i32
  }
  func.func @transform_7(%arg0: i32) -> (i32, i32, i32) {
    %c0_i32 = arith.constant 0 : i32
    %c0_i32_0 = arith.constant 0 : i32
    %c0_i32_1 = arith.constant 0 : i32
    return %arg0, %c0_i32, %c0_i32_0 : i32, i32, i32
  }
  func.func @transform_8(%arg0: i32) -> (i32, i32, i32) {
    %c0_i32 = arith.constant 0 : i32
    %c0_i32_0 = arith.constant 0 : i32
    %c0_i32_1 = arith.constant 0 : i32
    return %arg0, %c0_i32, %c0_i32_0 : i32, i32, i32
  }
}

</mosaic_0001>

<bundles_post_ra>
// kernel: conv_layer_forward.3
= control target key start
LH: loop header
LB: loop body
LE: loop exit
PB: predicated region body
PF: predicated region fallthrough
CT: control target
= control target key end

     0   :  { %s635_s15 = smov 0   ;;  %s637_s16 = smov 0   ;;  %s711_s0 = inlined_call_operand.vmem [shape: f32[2,16,28], index: 0, kind: input, shape index: {}]   ;;  %s712_s1 = inlined_call_operand.vmem [shape: f32[28,64], index: 1, kind: input, shape index: {}]   ;;  %s713_s2 = inlined_call_operand.vmem [shape: bf16[2,16,64], index: 2, kind: output, shape index: {0}]   ;;  %s714_s3 = inlined_call_operand.vmem [shape: f32[2,1,64], index: 3, kind: output, shape index: {1}]   ;;  %s715_s4 = inlined_call_operand.vmem [shape: f32[2,1,64], index: 4, kind: output, shape index: {2}]  }
   0x1   :  { %s639_s17 = smov 0  }
   0x2 LB: > { %s648_s18 = sadd.s32 4294967295, %s608_s17   ;;  %s650_s19 = sadd.s32 1, %s608_s17   ;;  %s608_s17 = sphi %s639_s17, %s719_s17   ;;  %s604_s16 = sphi %s637_s16, %s718_s16   ;;  %s600_s15 = sphi %s635_s15, %s717_s15  }
   0x3   : > { %s19_s20 = ssub.s32 %s608_s17, %s650_s19  ;;  %s22_s21 = sadd.s32 1, %s604_s16 }
   0x4   : > { %p20_p0 = scmp.eq.s32.totalorder %s19_s20, 0  ;;  %p29_p1 = scmp.ne.s32.totalorder %s604_s16, %s600_s15 }
   0x5   : > { %p30_p2 = scmp.eq.s32.totalorder %s608_s17, 0  ;;  %p80_p3 = scmp.eq.s32.totalorder %s648_s18, 1 }
   0x6   : > { %s658_s22 = scalar_select %p20_p0, %s604_s16, %s22_s21  }
   0x7   : > { %p31_p4 = por %p30_p2, %p29_p1  ;;  %p660_p5 = por %p80_p3, %p29_p1 }
   0x8   : > { %p532_p6 = scmp.ge.s32.totalorder %s608_s17, 2 }
   0xa   : > { %157 = sbr.rel (%p532_p6) target bundleno = 20 (0x14), region = 20 }
   0xf   : > { %160 = sbr.rel (!%p31_p4) target bundleno = 20 (0x14), region = 24  ;;  %s162_s24 = sand.u32 (%p31_p4), 1, %s604_s16  }
  0x10   : > { %s534_s25 = sshll.u32 (%p31_p4), %s608_s17, 3  ;;  %s533_s26 = sshll.u32 (%p31_p4), %s162_s24, 4 }
  0x11   : > { %s166_s29 = scalar_lea.vmem (%p31_p4), %s711_s0, %s534_s25  ;;  %s164_s30 = scalar_lea.vmem (%p31_p4), [#allocation2], %s533_s26 }
  0x12   : > { %v197_v0 = vld [vmem:[%s166_s29] sm:$0xff] (%p31_p4)  ;;  %v199_v1 = vld [vmem:[%s166_s29 + $0x10] sm:$0xff] (%p31_p4) }
  0x13   : > { %198 = vst [vmem:[%s164_s30] sm:$0xff] (%p31_p4), %v197_v0  ;;  %200 = vst [vmem:[%s164_s30 + $0x8] sm:$0xff] (%p31_p4), %v199_v1 }
  0x14 PF: > { %p535_p7 = scmp.ge.s32.totalorder %s608_s17, 1  ;;  %p205_p8 = scmp.lt.s32.totalorder %s608_s17, 3 }
  0x16   : > { %p206_p9 = pnand %p535_p7, %p205_p8 }
  0x17   : > { %s212_s9 = sand.u32 (!%p206_p9), 1, %s600_s15   ;;  %p242_p10 = scmp.lt.s32.totalorder (!%p206_p9), %s648_s18, 1 }
  0x18   : > { %209 = sbr.rel (%p206_p9) target bundleno = 251 (0xfb), region = 62  ;;  %s536_s10 = sshll.u32 (!%p206_p9), %s212_s9, 4 }
  0x19   : > { %s214_s13 = scalar_lea.vmem (!%p206_p9), [#allocation2], %s536_s10  ;;  %s537_s15 = sshll.u32 (!%p206_p9), %s212_s9, 3 }
  0x1a   : > { %s681_s20 = scalar_lea.vmem (!%p206_p9), [#allocation3], %s537_s15 }
  0x1d   : > { %v253_v2 = vld [vmem:[%s712_s1 + $0x18] sm:$0xf]  ;;  %vm261_vm0 = vcmask 1043456   ;;  %v252_v3 = vld [vmem:[%s712_s1 + $0x10] sm:$0xff]  ;;  %vm254_vm1 = vcmask 228352   ;;  %v251_v4 = vld [vmem:[%s712_s1 + $0x8] sm:$0xff] }
  0x1e   : > { %551 = vmatprep.subr.msk.mxu0 %vm261_vm0, %v253_v2  ;;  %v248_v5 = vld [vmem:[%s214_s13] sm:$0xff]  ;;  %v249_v7 = vld [vmem:[%s214_s13 + $0x8] sm:$0xff]  ;;  %vm342_vm2 = vcmask 519168   ;;  %vm345_vm3 = vcmask 523264   ;;  %s243_s21 = scalar_select %p242_p10, %s648_s18, 1  ;;  %vm355_vm4 = vcmask 516096  }
  0x1f   : > { %552 = vmatpush3.msk.msra.mxu0 %vm261_vm0, %v253_v2  ;;  %v250_v6 = vld [vmem:[%s712_s1] sm:$0xff]  ;;  %559 = vmatprep.mubr.msk.f32.mxu0 %vm254_vm1, %v248_v5  ;;  %s542_s30 = sshll.u32 (%p660_p5), %s648_s18, 2 }
  0x20   : > { %553 = vmatprep.subr.mxu0 %v252_v3  ;;  %s244_s26 = scalar_lea.vmem %s714_s3, %s243_s21  ;;  %s247_s29 = scalar_lea.vmem %s715_s4, %s243_s21 }
  0x21   : > { %554 = vmatpush3.msra.mxu0 %v252_v3  ;;  %s383_s7 = scalar_lea.vmem (%p660_p5), %s713_s2, %s542_s30 }
  0x22   : > { %555 = vmatprep.subr.mxu0 %v251_v4 }
  0x23   : > { %556 = vmatpush3.msra.mxu0 %v251_v4 }
  0x24   : > { %557 = vmatprep.subr.mxu0 %v250_v6 }
  0x25   : > { %558 = vmatpush3.msra.mxu0 %v250_v6 }
  0x26   : > { %560 = vmatmul.mubr.msk.f32.vlgmr.msra.gmra.mxu0 %vm254_vm1, %v249_v7 }
  0xe6   : > { %v561_v8 = vpop.f32.mrf.mxu0 }
  0xe7   : > { %v341_v9 = vpack.c.bf16 %v561_v8, %v561_v8  ;;  %v358_v10 = vmul.f32 %v561_v8, %v561_v8  ;;  %v347_v12 = vsel %vm345_vm3, %v561_v8, 0.0 }
  0xe8   : > { %v331_v11 = vpop.f32.mrf.mxu0 }
  0xe9   : > { %344 = vst.msk [vmem:[%s681_s20 + $0x4] sm:$0xf] %vm342_vm2, %v341_v9  ;;  %v340_v13 = vpack.c.bf16 %v331_v11, %v331_v11  ;;  %v346_v14 = vsel %vm345_vm3, %v331_v11, 0.0  ;;  %v357_v15 = vmul.f32 %v331_v11, %v331_v11  ;;  %v360_v17 = vsel %vm345_vm3, %v358_v10, 0.0 }
  0xea   : > { %v348_v16 = vadd.f32 %v347_v12, %v346_v14 }
  0xeb   : > { %343 = vst.msk [vmem:[%s681_s20] sm:$0xf] %vm342_vm2, %v340_v13  ;;  %v359_v18 = vsel %vm345_vm3, %v357_v15, 0.0 }
  0xec   : > { %v349_v19 = vrot.slane %v348_v16, 4  ;;  %v361_v20 = vadd.f32 %v360_v17, %v359_v18 }
  0xee   : > { %v350_v21 = vadd.f32 %v349_v19, %v348_v16  ;;  %v362_v22 = vrot.slane %v361_v20, 4 }
  0xf0   : > { %v351_v23 = vrot.slane %v350_v21, 2  ;;  %v363_v24 = vadd.f32 %v362_v22, %v361_v20  ;;  %v402_v33 = vld [vmem:[%s681_s20 + $0x4] sm:$0xf] (%p660_p5) }
  0xf1   : > { %403 = vst [vmem:[%s383_s7 + $0x8] sm:$0xf] (%p660_p5), %v402_v33 }
  0xf2   : > { %v352_v25 = vadd.f32 %v351_v23, %v350_v21  ;;  %v364_v26 = vrot.slane %v363_v24, 2  ;;  %v400_v32 = vld [vmem:[%s681_s20] sm:$0xf] (%p660_p5) }
  0xf3   : > { %401 = vst [vmem:[%s383_s7] sm:$0xf] (%p660_p5), %v400_v32 }
  0xf4   : > { %v353_v27 = vrot.slane %v352_v25, 1  ;;  %v365_v28 = vadd.f32 %v364_v26, %v363_v24 }
  0xf6   : > { %v354_v29 = vadd.f32 %v353_v27, %v352_v25  ;;  %v366_v30 = vrot.slane %v365_v28, 1  ;;  %381 = sbr.rel (!%p660_p5) target bundleno = 251 (0xfb), region = 70 }
  0xf8   : > { %356 = vst.msk [vmem:[%s244_s26] sm:$0x1] %vm355_vm4, %v354_v29  ;;  %v367_v31 = vadd.f32 %v366_v30, %v365_v28 }
  0xfa   : > { %368 = vst.msk [vmem:[%s247_s29] sm:$0x1] %vm355_vm4, %v367_v31 }
  0xfb PF: > { %p12_p11 = scmp.ge.s32.totalorder %s650_s19, 4   ;;  %s717_s15 = smov %s604_s16 }
  0xfc   : > { %s718_s16 = smov %s658_s22  ;;  %s719_s17 = smov %s650_s19 }
  0xfd   :  { %14 = sbr.rel (!%p12_p11) target bundleno = 2 (0x2), region = 166 }

// kernel: conv_layer_forward.5
= control target key start
LH: loop header
LB: loop body
LE: loop exit
PB: predicated region body
PF: predicated region fallthrough
CT: control target
= control target key end

     0   :  { %vm116_vm0 = vcmask 130048   ;;  %s325_s0 = inlined_call_operand.vmem [shape: bf16[2,16,128], index: 0, kind: input, shape index: {}]   ;;  %s326_s1 = inlined_call_operand.vmem [shape: f32[1,1,128], index: 1, kind: input, shape index: {}]   ;;  %s327_s2 = inlined_call_operand.vmem [shape: f32[1,1,128], index: 2, kind: input, shape index: {}]   ;;  %s328_s3 = inlined_call_operand.vmem [shape: f32[2,128,16], index: 3, kind: output, shape index: {}]  }
   0x1   :  { %v163_v0 = vld [vmem:[%s325_s0 + $0x8] sm:$0xff]   ;;  %v153_v1 = vld [vmem:[%s326_s1] ss:$0 sm:$0xff] }
   0x2   :  { %v161_v2 = vunpack.c.l.bf16 %v163_v0  ;;  %v156_v3 = vld [vmem:[%s325_s0] sm:$0xff]   ;;  %v162_v4 = vunpack.c.h.bf16 %v163_v0 }
   0x3   :  { %v154_v5 = vld [vmem:[%s327_s2] ss:$0 sm:$0xff]  ;;  %v157_v6 = vunpack.c.l.bf16 %v156_v3  ;;  %v158_v7 = vunpack.c.h.bf16 %v156_v3 }
   0x4   :  { %v31_v8 = vmul.f32 %v161_v2, %v153_v1  ;;  %v32_v9 = vmul.f32 %v162_v4, %v153_v1 }
   0x5   :  { %v29_v10 = vmul.f32 %v157_v6, %v153_v1  ;;  %v30_v11 = vmul.f32 %v158_v7, %v153_v1 }
   0x6   :  { %v42_v12 = vadd.f32 %v154_v5, %v31_v8  ;;  %v43_v13 = vadd.f32 %v154_v5, %v32_v9 }
   0x7   :  { %v40_v14 = vadd.f32 %v154_v5, %v29_v10  ;;  %v41_v15 = vadd.f32 %v154_v5, %v30_v11 }
   0x8   :  { %v46_v16 = vmul.f32 0.2, %v42_v12  ;;  %v47_v17 = vmul.f32 0.2, %v43_v13 }
   0x9   :  { %v44_v18 = vmul.f32 0.2, %v40_v14  ;;  %v45_v19 = vmul.f32 0.2, %v41_v15 }
   0xa   :  { %v50_v20 = vmax.f32 %v42_v12, %v46_v16  ;;  %v51_v22 = vmax.f32 %v43_v13, %v47_v17 }
   0xb   :  { %v48_v21 = vmax.f32 %v40_v14, %v44_v18  ;;  %v49_v23 = vmax.f32 %v41_v15, %v45_v19 }
   0xc   :  { %84 = vxpose.xlu1.b32.start [1/2] (short) %v50_v20, 128 }
   0xd   :  { %52 = vxpose.xlu0.b32.start [1/2] (short) %v48_v21, 128 }
  0x10   :  { %85 = vxpose.xlu1.b32.end [2/2] (short) %v51_v22, 128 }
  0x11   :  { %53 = vxpose.xlu0.b32.end [2/2] (short) %v49_v23, 128 }
  0x88   :  { %v100_v24 = vpop.trf.xlu1 }
  0x89   :  { %133 = vst.msk [vmem:[%s328_s3 + $0x80] sm:$0xff] %vm116_vm0, %v100_v24  ;;  %v68_v25 = vpop.trf.xlu0 }
  0x8a   :  { %117 = vst.msk [vmem:[%s328_s3] sm:$0xff] %vm116_vm0, %v68_v25 }
  0x8c   :  { %v101_v26 = vpop.trf.xlu1 }
  0x8d   :  { %134 = vst.msk [vmem:[%s328_s3 + $0x88] sm:$0xff] %vm116_vm0, %v101_v26  ;;  %v69_v27 = vpop.trf.xlu0 }
  0x8e   :  { %118 = vst.msk [vmem:[%s328_s3 + $0x8] sm:$0xff] %vm116_vm0, %v69_v27 }
  0x90   :  { %v102_v28 = vpop.trf.xlu1 }
  0x91   :  { %135 = vst.msk [vmem:[%s328_s3 + $0x90] sm:$0xff] %vm116_vm0, %v102_v28  ;;  %v70_v29 = vpop.trf.xlu0 }
  0x92   :  { %119 = vst.msk [vmem:[%s328_s3 + $0x10] sm:$0xff] %vm116_vm0, %v70_v29 }
  0x94   :  { %v103_v30 = vpop.trf.xlu1 }
  0x95   :  { %136 = vst.msk [vmem:[%s328_s3 + $0x98] sm:$0xff] %vm116_vm0, %v103_v30  ;;  %v71_v31 = vpop.trf.xlu0 }
  0x96   :  { %120 = vst.msk [vmem:[%s328_s3 + $0x18] sm:$0xff] %vm116_vm0, %v71_v31 }
  0x98   :  { %v104_v32 = vpop.trf.xlu1 }
  0x99   :  { %137 = vst.msk [vmem:[%s328_s3 + $0xa0] sm:$0xff] %vm116_vm0, %v104_v32  ;;  %v72_v33 = vpop.trf.xlu0 }
  0x9a   :  { %121 = vst.msk [vmem:[%s328_s3 + $0x20] sm:$0xff] %vm116_vm0, %v72_v33 }
  0x9c   :  { %v105_v34 = vpop.trf.xlu1 }
  0x9d   :  { %138 = vst.msk [vmem:[%s328_s3 + $0xa8] sm:$0xff] %vm116_vm0, %v105_v34  ;;  %v73_v35 = vpop.trf.xlu0 }
  0x9e   :  { %122 = vst.msk [vmem:[%s328_s3 + $0x28] sm:$0xff] %vm116_vm0, %v73_v35 }
  0xa0   :  { %v106_v36 = vpop.trf.xlu1 }
  0xa1   :  { %139 = vst.msk [vmem:[%s328_s3 + $0xb0] sm:$0xff] %vm116_vm0, %v106_v36  ;;  %v74_v37 = vpop.trf.xlu0 }
  0xa2   :  { %123 = vst.msk [vmem:[%s328_s3 + $0x30] sm:$0xff] %vm116_vm0, %v74_v37 }
  0xa4   :  { %v107_v38 = vpop.trf.xlu1 }
  0xa5   :  { %140 = vst.msk [vmem:[%s328_s3 + $0xb8] sm:$0xff] %vm116_vm0, %v107_v38  ;;  %v75_v39 = vpop.trf.xlu0 }
  0xa6   :  { %124 = vst.msk [vmem:[%s328_s3 + $0x38] sm:$0xff] %vm116_vm0, %v75_v39 }
  0xa8   :  { %v108_v40 = vpop.trf.xlu1 }
  0xa9   :  { %141 = vst.msk [vmem:[%s328_s3 + $0xc0] sm:$0xff] %vm116_vm0, %v108_v40  ;;  %v76_v41 = vpop.trf.xlu0 }
  0xaa   :  { %125 = vst.msk [vmem:[%s328_s3 + $0x40] sm:$0xff] %vm116_vm0, %v76_v41 }
  0xac   :  { %v109_v42 = vpop.trf.xlu1 }
  0xad   :  { %142 = vst.msk [vmem:[%s328_s3 + $0xc8] sm:$0xff] %vm116_vm0, %v109_v42  ;;  %v77_v43 = vpop.trf.xlu0 }
  0xae   :  { %126 = vst.msk [vmem:[%s328_s3 + $0x48] sm:$0xff] %vm116_vm0, %v77_v43 }
  0xb0   :  { %v110_v44 = vpop.trf.xlu1 }
  0xb1   :  { %143 = vst.msk [vmem:[%s328_s3 + $0xd0] sm:$0xff] %vm116_vm0, %v110_v44  ;;  %v78_v45 = vpop.trf.xlu0 }
  0xb2   :  { %127 = vst.msk [vmem:[%s328_s3 + $0x50] sm:$0xff] %vm116_vm0, %v78_v45 }
  0xb4   :  { %v111_v46 = vpop.trf.xlu1 }
  0xb5   :  { %144 = vst.msk [vmem:[%s328_s3 + $0xd8] sm:$0xff] %vm116_vm0, %v111_v46  ;;  %v79_v47 = vpop.trf.xlu0 }
  0xb6   :  { %128 = vst.msk [vmem:[%s328_s3 + $0x58] sm:$0xff] %vm116_vm0, %v79_v47 }
  0xb8   :  { %v112_v48 = vpop.trf.xlu1 }
  0xb9   :  { %145 = vst.msk [vmem:[%s328_s3 + $0xe0] sm:$0xff] %vm116_vm0, %v112_v48  ;;  %v80_v49 = vpop.trf.xlu0 }
  0xba   :  { %129 = vst.msk [vmem:[%s328_s3 + $0x60] sm:$0xff] %vm116_vm0, %v80_v49 }
  0xbc   :  { %v113_v50 = vpop.trf.xlu1 }
  0xbd   :  { %146 = vst.msk [vmem:[%s328_s3 + $0xe8] sm:$0xff] %vm116_vm0, %v113_v50  ;;  %v81_v51 = vpop.trf.xlu0 }
  0xbe   :  { %130 = vst.msk [vmem:[%s328_s3 + $0x68] sm:$0xff] %vm116_vm0, %v81_v51 }
  0xc0   :  { %v114_v52 = vpop.trf.xlu1 }
  0xc1   :  { %147 = vst.msk [vmem:[%s328_s3 + $0xf0] sm:$0xff] %vm116_vm0, %v114_v52  ;;  %v82_v53 = vpop.trf.xlu0 }
  0xc2   :  { %131 = vst.msk [vmem:[%s328_s3 + $0x70] sm:$0xff] %vm116_vm0, %v82_v53 }
  0xc4   :  { %v115_v54 = vpop.trf.xlu1 }
  0xc5   :  { %148 = vst.msk [vmem:[%s328_s3 + $0xf8] sm:$0xff] %vm116_vm0, %v115_v54  ;;  %v83_v55 = vpop.trf.xlu0 }
  0xc6   :  { %132 = vst.msk [vmem:[%s328_s3 + $0x78] sm:$0xff] %vm116_vm0, %v83_v55 }

// kernel: conv_layer_forward.4
= control target key start
LH: loop header
LB: loop body
LE: loop exit
PB: predicated region body
PF: predicated region fallthrough
CT: control target
= control target key end

     0   :  { %s2421_s0 = inlined_call_operand.vmem [shape: bf16[2,16,64], index: 0, kind: input, shape index: {}, may-alias: {0,1,2}]   ;;  %s2422_s1 = inlined_call_operand.vmem [shape: bf16[2,16,64], index: 1, kind: input, shape index: {}, may-alias: {0,1,2}]   ;;  %s2423_s2 = inlined_call_operand.vmem [shape: bf16[2,16,64], index: 2, kind: input, shape index: {}, may-alias: {0,1,2}]   ;;  %s2424_s3 = inlined_call_operand.vmem [shape: f32[1,1,64], index: 3, kind: input, shape index: {}]   ;;  %s2425_s4 = inlined_call_operand.vmem [shape: f32[1,1,64], index: 4, kind: input, shape index: {}]   ;;  %s2426_s5 = inlined_call_operand.vmem [shape: bf16[7,64,128], index: 5, kind: input, shape index: {}]   ;;  %s2427_s6 = inlined_call_operand.vmem [shape: bf16[2,16,128], index: 6, kind: output, shape index: {0}]   ;;  %s2428_s7 = inlined_call_operand.vmem [shape: f32[2,1,128], index: 7, kind: output, shape index: {1}]   ;;  %s2429_s8 = inlined_call_operand.vmem [shape: f32[2,1,128], index: 8, kind: output, shape index: {2}]  }
   0x1   :  { %2433 = sst [smem:[#allocation11_spill]] %s2427_s6 }
   0x2   :  { %s2025_s27 = smov 0   ;;  %s2027_s28 = smov 0  }
   0x3   :  { %s2029_s29 = smov 0   ;;  %s2031_s30 = smov 0  }
   0x4   :  { %s2033_s9 = smov 0   ;;  %s2035_s10 = smov 0  }
   0x5   :  { %s2037_s11 = smov 0  }
   0x6 LB: > { %2434 = sst [smem:[#allocation6_spill]] %s1972_s10  ;;  %s2061_s12 = sadd.s32 4294967295, %s1976_s11   ;;  %s1976_s11 = sphi %s2037_s11, %s2448_s11   ;;  %s1972_s10 = sphi %s2035_s10, %s2452_s10   ;;  %s1968_s9 = sphi %s2033_s9, %s2451_s9   ;;  %s1964_s30 = sphi %s2031_s30, %s2456_s30   ;;  %s1960_s29 = sphi %s2029_s29, %s2455_s29   ;;  %s1956_s28 = sphi %s2027_s28, %s2454_s28   ;;  %s1952_s27 = sphi %s2025_s27, %s2453_s27  }
   0x7   : > { %s2064_s13 = sadd.s32 1, %s1976_s11   ;;  %p24_p0 = scmp.gt.s32.totalorder %s2061_s12, 0 }
   0x8   : > { %2435 = sst [smem:[#allocation7_spill]] %s2064_s13  ;;  %s1572_s14 = sadd.s32 4294967295, %s2064_s13 }
   0x9   : > { %p27_p1 = scmp.gt.s32.totalorder %s1572_s14, 0  ;;  %s32_s15 = sadd.s32 1, %s1972_s10 }
   0xa   : > { %s2070_s16 = scalar_select %p24_p0, %s2061_s12, 0 }
   0xb   : > { %s2458_s14 = smov (!%p27_p1, %s1572_s14), 0  ;;  %p39_p2 = scmp.ne.s32.totalorder %s1972_s10, %s1968_s9 }
   0xc   : > { %p40_p3 = scmp.eq.s32.totalorder %s1976_s11, 0  ;;  %s29_s17 = ssub.s32 %s2070_s16, %s2458_s14 }
   0xd   : > { %s55_s18 = ssub.s32 %s1976_s11, %s2064_s13  ;;  %p30_p4 = scmp.eq.s32.totalorder %s29_s17, 0 }
   0xe   : > { %p2080_p5 = por %p40_p3, %p39_p2  ;;  %p56_p6 = scmp.eq.s32.totalorder %s55_s18, 0 }
   0xf   : > { %s58_s20 = sadd.s32 1, %s1964_s30  ;;  %p65_p7 = scmp.ne.s32.totalorder %s1964_s30, %s1960_s29 }
  0x10   : > { %s2086_s21 = scalar_select %p30_p4, %s1972_s10, %s32_s15  }
  0x11   : > { %s2089_s22 = scalar_select %p56_p6, %s1964_s30, %s58_s20  }
  0x12   : > { %2437 = sst [smem:[#allocation8_spill]] %s2086_s21  ;;  %p82_p8 = scmp.lt.s32.totalorder %s2064_s13, 1 }
  0x13   : > { %2438 = sst [smem:[#allocation9_spill]] %s2089_s22  ;;  %s84_s23 = sadd.s32 1, %s2064_s13 }
  0x14   : > { %p2100_p9 = por %p65_p7, %p40_p3  ;;  %p85_p10 = scmp.lt.s32.totalorder %s84_s23, 1 }
  0x15   : > { %s2105_s25 = scalar_select %p82_p8, %s2064_s13, 1 }
  0x16   : > { %s2460_s23 = smov (!%p85_p10, %s84_s23), 1  ;;  %p97_p11 = scmp.ne.s32.totalorder %s1956_s28, %s1952_s27 }
  0x17   : > { %p190_p12 = scmp.eq.s32.totalorder %s2061_s12, 1  ;;  %s87_s26 = ssub.s32 %s2105_s25, %s2460_s23 }
  0x18   : > { %s90_s14 = sadd.s32 1, %s1956_s28  ;;  %p88_p13 = scmp.eq.s32.totalorder %s87_s26, 0 }
  0x19   : > { %p2114_p0 = por %p97_p11, %p40_p3  ;;  %p2121_p1 = por %p190_p12, %p65_p7 }
  0x1a   : > { %s2126_s18 = scalar_select %p88_p13, %s1956_s28, %s90_s14  }
  0x1b   : > { %p1574_p2 = scmp.ge.s32.totalorder %s1976_s11, 2 }
  0x1c   : > { %2442 = sst [smem:[#allocation10_spill]] %s2126_s18 }
  0x1d   : > { %273 = sbr.rel (%p1574_p2) target bundleno = 49 (0x31), region = 28 }
  0x22   : > { %276 = sbr.rel (!%p2080_p5) target bundleno = 39 (0x27), region = 32  ;;  %s278_s20 = sand.u32 (%p2080_p5), 1, %s1972_s10  }
  0x23   : > { %s1577_s23 = sshll.u32 (%p2080_p5), %s2070_s16, 2  ;;  %s1575_s26 = sshll.u32 (%p2080_p5), %s278_s20, 3 }
  0x24   : > { %s285_s13 = scalar_lea.vmem (%p2080_p5), %s2421_s0, %s1577_s23  ;;  %s280_s6 = scalar_lea.vmem (%p2080_p5), [#allocation2], %s1575_s26 }
  0x25   : > { %v302_v0 = vld [vmem:[%s285_s13] sm:$0xf] (%p2080_p5)  ;;  %v304_v1 = vld [vmem:[%s285_s13 + $0x8] sm:$0xf] (%p2080_p5) }
  0x26   : > { %303 = vst [vmem:[%s280_s6] sm:$0xf] (%p2080_p5), %v302_v0  ;;  %305 = vst [vmem:[%s280_s6 + $0x4] sm:$0xf] (%p2080_p5), %v304_v1 }
  0x27 PF: > { %333 = sbr.rel (!%p2100_p9) target bundleno = 44 (0x2c), region = 73  ;;  %s335_s19 = sand.u32 (%p2100_p9), 1, %s1964_s30  }
  0x28   : > { %s1579_s14 = sshll.u32 (%p2100_p9), %s1976_s11, 2  ;;  %s1578_s10 = sshll.u32 (%p2100_p9), %s335_s19, 3 }
  0x29   : > { %s339_s18 = scalar_lea.vmem (%p2100_p9), %s2422_s1, %s1579_s14  ;;  %s337_s21 = scalar_lea.vmem (%p2100_p9), [#allocation3], %s1578_s10 }
  0x2a   : > { %v356_v2 = vld [vmem:[%s339_s18] sm:$0xf] (%p2100_p9)  ;;  %v358_v3 = vld [vmem:[%s339_s18 + $0x8] sm:$0xf] (%p2100_p9) }
  0x2b   : > { %357 = vst [vmem:[%s337_s21] sm:$0xf] (%p2100_p9), %v356_v2  ;;  %359 = vst [vmem:[%s337_s21 + $0x4] sm:$0xf] (%p2100_p9), %v358_v3 }
  0x2c PF: > { %387 = sbr.rel (!%p2114_p0) target bundleno = 49 (0x31), region = 114  ;;  %s389_s6 = sand.u32 (%p2114_p0), 1, %s1956_s28  }
  0x2d   : > { %s1581_s13 = sshll.u32 (%p2114_p0), %s2105_s25, 2  ;;  %s1580_s22 = sshll.u32 (%p2114_p0), %s389_s6, 3 }
  0x2e   : > { %s396_s26 = scalar_lea.vmem (%p2114_p0), %s2423_s2, %s1581_s13  ;;  %s391_s19 = scalar_lea.vmem (%p2114_p0), [#allocation4], %s1580_s22 }
  0x2f   : > { %v413_v4 = vld [vmem:[%s396_s26] sm:$0xf] (%p2114_p0)  ;;  %v415_v5 = vld [vmem:[%s396_s26 + $0x8] sm:$0xf] (%p2114_p0) }
  0x30   : > { %414 = vst [vmem:[%s391_s19] sm:$0xf] (%p2114_p0), %v413_v4  ;;  %416 = vst [vmem:[%s391_s19 + $0x4] sm:$0xf] (%p2114_p0), %v415_v5 }
  0x31 PF: > { %p1582_p3 = scmp.ge.s32.totalorder %s1976_s11, 1  ;;  %p443_p4 = scmp.lt.s32.totalorder %s1976_s11, 3 }
  0x33   : > { %p444_p5 = pnand %p1582_p3, %p443_p4 }
  0x34   : > { %s450_s16 = sand.u32 (!%p444_p5), 1, %s1968_s9   ;;  %s457_s24 = sand.u32 (!%p444_p5), 1, %s1960_s29  }
  0x35   : > { %447 = sbr.rel (%p444_p5) target bundleno = 362 (0x16a), region = 155  ;;  %s1583_s6 = sshll.u32 (!%p444_p5), %s450_s16, 3 }
  0x36   : > { %s2177_s9 = sshll.u32 (!%p444_p5), %s457_s24, 3  ;;  %s464_s25 = sand.u32 (!%p444_p5), 1, %s1952_s27  }
  0x37   : > { %s452_s15 = scalar_lea.vmem (!%p444_p5), [#allocation2], %s1583_s6  ;;  %s2191_s14 = sshll.u32 (!%p444_p5), %s464_s25, 3 }
  0x38   : > { %s459_s11 = scalar_lea.vmem (!%p444_p5), [#allocation3], %s2177_s9  ;;  %s466_s16 = scalar_lea.vmem (!%p444_p5), [#allocation4], %s2191_s14 }
  0x39   : > { %s1595_s27 = sshll.u32 (!%p444_p5), %s2061_s12, 3  ;;  %s499_s10 = scalar_lea.vmem (!%p444_p5), [#allocation5], %s2177_s9 }
  0x3a   : > { %v1888_v6 = vld [vmem:[%s2426_s5 + $0x38] sm:$0xff]   ;;  %v1978_v7 = vmov 0.0   ;;  %v1890_v9 = vld [vmem:[%s2426_s5 + $0x30] sm:$0xff]   ;;  %vm1979_vm0 = vmmov 0   ;;  %v1892_v11 = vld [vmem:[%s2426_s5 + $0x28] sm:$0xff]   ;;  %vm601_vm1 = vcmask 1041408   ;;  %v647_v26 = vlaneseq }
  0x3b   : > { %1746 = vmatprep.subr.bf16.mxu0 %v1978_v7  ;;  %1758 = vmatprep.subr.bf16.mxu1 %v1978_v7  ;;  %v1889_v8 = vld [vmem:[%s2426_s5 + $0x18] sm:$0xff]   ;;  %v1891_v10 = vld [vmem:[%s2426_s5 + $0x10] sm:$0xff]   ;;  %v1893_v12 = vld [vmem:[%s2426_s5 + $0x8] sm:$0xff]   ;;  %vm606_vm2 = vcmask 1045504   ;;  %vm602_vm3 = vsmask.f32 1280 }
  0x3c   : > { %1747 = vmatpush3.bf16.msra.mxu0 %v1888_v6  ;;  %1754 = vmatprep.mubr.msk.bf16.mxu0 %vm1979_vm0, %v1978_v7  ;;  %v1894_v13 = vld [vmem:[%s2426_s5 + $0x20] sm:$0xff]   ;;  %v1898_v16 = vld [vmem:[%s459_s11] ss:$0 sps:$4 sm:$0xff]   ;;  %v1899_v17 = vld [vmem:[%s459_s11 + $0x4] ss:$0 sps:$4 sm:$0xff]   ;;  %s1596_s20 = sadd.s32 4294967293, %s1595_s27 }
  0x3d   : > { %1759 = vmatpush3.bf16.msra.mxu1 %v1889_v8  ;;  %1748 = vmatprep.subr.bf16.mxu0 %v1978_v7  ;;  %v1895_v14 = vld [vmem:[%s2426_s5] sm:$0xff]   ;;  %v560_v21 = vshrl.u32 %v1898_v16, 16  ;;  %v563_v22 = vshll.u32 %v1898_v16, 16  ;;  %v568_v23 = vshrl.u32 %v1899_v17, 16  ;;  %v571_v24 = vshll.u32 %v1899_v17, 16  ;;  %vm603_vm4 = vmand %vm601_vm1, %vm602_vm3  ;;  %p516_p6 = scmp.lt.s32.totalorder %s2061_s12, 1 }
  0x3e   : > { %1760 = vmatprep.subr.bf16.mxu1 %v1978_v7  ;;  %1766 = vmatprep.mubr.msk.bf16.mxu1 %vm1979_vm0, %v1978_v7  ;;  %v1896_v15 = vld [vmem:[%s452_s15] ss:$0 sps:$4 sm:$0xcc]   ;;  %v1897_v18 = vld [vmem:[%s452_s15 + $0x4] ss:$0 sps:$4 sm:$0xcc]   ;;  %v650_v52 = vstv %s1596_s20 }
  0x3f   : > { %v536_v19 = vshrl.u32 %v1896_v15, 16  ;;  %v539_v20 = vshll.u32 %v1896_v15, 16  ;;  %v1900_v25 = vld [vmem:[%s466_s16] ss:$0 sps:$4 sm:$0x33]   ;;  %v544_v29 = vshrl.u32 %v1897_v18, 16 }
  0x40   : > { %1749 = vmatpush3.bf16.msra.mxu0 %v1890_v9  ;;  %v547_v30 = vshll.u32 %v1897_v18, 16  ;;  %v562_v31 = vrot.slane %v560_v21, 6  ;;  %v565_v32 = vrot.slane %v563_v22, 7  ;;  %v570_v33 = vrot.slane %v568_v23, 6  ;;  %v1593_v58 = vld [vmem:[%s2424_s3] ss:$0 sm:$0xff] }
  0x41   : > { %1761 = vmatpush3.bf16.msra.mxu1 %v1891_v10  ;;  %1750 = vmatprep.subr.bf16.mxu0 %v1978_v7  ;;  %v538_v27 = vrot.slane %v536_v19, 2  ;;  %v541_v28 = vrot.slane %v539_v20, 3  ;;  %v573_v34 = vrot.slane %v571_v24, 7  ;;  %v546_v36 = vrot.slane %v544_v29, 2  ;;  %v1594_v2 = vld [vmem:[%s2425_s4] ss:$0 sm:$0xff] }
  0x42   : > { %1762 = vmatprep.subr.bf16.mxu1 %v1978_v7  ;;  %v549_v37 = vrot.slane %v547_v30, 3  ;;  %v1901_v38 = vld [vmem:[%s466_s16 + $0x4] ss:$0 sps:$4 sm:$0x33]   ;;  %v584_v39 = vshrl.u32 %v1900_v25, 16  ;;  %v566_v40 = vor.u32 %v565_v32, %v562_v31  ;;  %v587_v42 = vshll.u32 %v1900_v25, 16 }
  0x43   : > { %v542_v35 = vor.u32 %v541_v28, %v538_v27  ;;  %v574_v41 = vor.u32 %v573_v34, %v570_v33  ;;  %v592_v45 = vshrl.u32 %v1901_v38, 16  ;;  %v595_v46 = vshll.u32 %v1901_v38, 16  ;;  %v1903_v22 = vld [vmem:[%s2426_s5 + $0x78] sm:$0xff]   ;;  %s517_s25 = scalar_select %p516_p6, %s2061_s12, 1 }
  0x44   : > { %1751 = vmatpush3.bf16.msra.mxu0 %v1892_v11  ;;  %v550_v43 = vor.u32 %v549_v37, %v546_v36  ;;  %v586_v44 = vrot.slane %v584_v39, 2  ;;  %v589_v47 = vrot.slane %v587_v42, 3  ;;  %vm607_vm5 = vsmask.f32 5376  ;;  %v1905_v36 = vld [vmem:[%s2426_s5 + $0x70] sm:$0xff]   ;;  %s1698_s16 = sshll.u32 (%p2121_p1), %s2061_s12, 2 }
  0x45   : > { %1763 = vmatpush3.bf16.msra.mxu1 %v1893_v12  ;;  %1752 = vmatprep.subr.bf16.mxu0 %v1978_v7  ;;  %v648_v48 = vshrl.u32 %v647_v26, 7  ;;  %v594_v49 = vrot.slane %v592_v45, 2  ;;  %v597_v50 = vrot.slane %v595_v46, 3  ;;  %v604_v51 = vsel %vm603_vm4, %v542_v35, %v566_v40  ;;  %vm608_vm6 = vmand %vm606_vm2, %vm607_vm5  ;;  %v1912_v46 = vld [vmem:[%s2426_s5 + $0x90] sm:$0xff]   ;;  %s518_s18 = scalar_lea.vmem %s2428_s7, %s517_s25  ;;  %s521_s11 = scalar_lea.vmem %s2429_s8, %s517_s25 }
  0x46   : > { %1764 = vmatprep.subr.bf16.mxu1 %v1978_v7  ;;  %v590_v53 = vor.u32 %v589_v47, %v586_v44  ;;  %v605_v54 = vsel %vm603_vm4, %v550_v43, %v574_v41  ;;  %vm687_vm13 = vsmask.f32 3328  ;;  %vm754_vm14 = vcmask 523264   ;;  %s2447_s21 = sld [smem:[#allocation11_spill]] (%p2121_p1) }
  0x47   : > { %v649_v55 = vadd.s32 8, %v648_v48  ;;  %v598_v56 = vor.u32 %v597_v50, %v594_v49  ;;  %v651_v59 = vadd.s32 %v650_v52, %v648_v48  ;;  %vm688_vm15 = vsmask.f32 7440  ;;  %v1907_v48 = vld [vmem:[%s2426_s5 + $0x68] sm:$0xff]  }
  0x48   : > { %1753 = vmatpush3.bf16.msra.mxu0 %v1894_v13  ;;  %v609_v57 = vsel %vm608_vm6, %v604_v51, %v590_v53  ;;  %vm961_vm2 = vsmask.f32 2304  ;;  %vm962_vm4 = vsmask.f32 6416  ;;  %vm2255_vm5 = vmor %vm687_vm13, %vm688_vm15  ;;  %vm1259_vm13 = vcmask 1044484  }
  0x49   : > { %1765 = vmatpush3.bf16.msra.mxu1 %v1895_v14  ;;  %1770 = vmatprep.subr.bf16.mxu0 %v1978_v7  ;;  %v610_v60 = vsel %vm608_vm6, %v605_v54, %v598_v56  ;;  %v611_v61 = vunpack.c.l.bf16 %v609_v57  ;;  %v612_v62 = vunpack.c.h.bf16 %v609_v57  ;;  %v652_v63 = vadd.s32 %v650_v52, %v649_v55  ;;  %vm2272_vm6 = vmor %vm961_vm2, %vm962_vm4 }
  0x4a   : > { %1782 = vmatprep.subr.bf16.mxu1 %v1978_v7  ;;  %v613_v0 = vunpack.c.l.bf16 %v610_v60  ;;  %v614_v1 = vunpack.c.h.bf16 %v610_v60  ;;  %vm653_vm7 = vcmp.ge.s32.totalorder %v651_v59, 0  ;;  %vm655_vm8 = vcmp.lt.s32.totalorder %v651_v59, 16  ;;  %v1920_v59 = vld [vmem:[%s2426_s5 + $0xc8] sm:$0xff]  }
  0x4b   : > { %v622_v3 = vmul.f32 %v1593_v58, %v611_v61  ;;  %v623_v4 = vmul.f32 %v1593_v58, %v612_v62  ;;  %vm654_vm9 = vcmp.ge.s32.totalorder %v652_v63, 0  ;;  %vm656_vm10 = vcmp.lt.s32.totalorder %v652_v63, 16  ;;  %vm657_vm11 = vmand %vm653_vm7, %vm655_vm8 }
  0x4c   : > { %v624_v5 = vmul.f32 %v1593_v58, %v613_v0  ;;  %v625_v6 = vmul.f32 %v1593_v58, %v614_v1  ;;  %vm658_vm12 = vmand %vm654_vm9, %vm656_vm10  ;;  %v1902_v0 = vld [vmem:[%s2426_s5 + $0x58] sm:$0xff]   ;;  %vm868_vm7 = vcmask 1042432   ;;  %vm869_vm8 = vcmask 1046532   ;;  %s1387_s6 = scalar_lea.vmem (%p2121_p1), %s2447_s21, %s1698_s16 }
  0x4d   : > { %v633_v8 = vadd.f32 %v1594_v2, %v622_v3  ;;  %v634_v9 = vadd.f32 %v1594_v2, %v623_v4  ;;  %v1909_v4 = vld [vmem:[%s2426_s5 + $0x60] sm:$0xff]   ;;  %vm870_vm9 = vmor %vm868_vm7, %vm869_vm8  ;;  %vm1158_vm10 = vsmask.f32 5392 }
  0x4e   : > { %v635_v10 = vadd.f32 %v1594_v2, %v624_v5  ;;  %v636_v11 = vadd.f32 %v1594_v2, %v625_v6 }
  0x4f   : > { %v637_v12 = vmul.f32 0.2, %v633_v8  ;;  %v638_v13 = vmul.f32 0.2, %v634_v9 }
  0x50   : > { %v639_v14 = vmul.f32 0.2, %v635_v10  ;;  %v640_v15 = vmul.f32 0.2, %v636_v11 }
  0x51   : > { %v641_v16 = vmax.f32 %v633_v8, %v637_v12  ;;  %v642_v17 = vmax.f32 %v634_v9, %v638_v13  ;;  %v1904_v9 = vld [vmem:[%s2426_s5 + $0x50] sm:$0xff]   ;;  %v1911_v13 = vld [vmem:[%s2426_s5 + $0xb8] sm:$0xff]  }
  0x52   : > { %v643_v18 = vmax.f32 %v635_v10, %v639_v14  ;;  %v644_v19 = vmax.f32 %v636_v11, %v640_v15 }
  0x53   : > { %v663_v20 = vsel %vm657_vm11, %v641_v16, 0.0  ;;  %v664_v21 = vsel %vm658_vm12, %v642_v17, 0.0 }
  0x54   : > { %v665_v23 = vsel %vm657_vm11, %v643_v18, 0.0  ;;  %v666_v24 = vsel %vm658_vm12, %v644_v19, 0.0  ;;  %v2212_v25 = vpack.c.bf16 %v663_v20, %v663_v20  ;;  %v2214_v26 = vpack.c.bf16 %v664_v21, %v664_v21  ;;  %v1906_v19 = vld [vmem:[%s2426_s5 + $0x48] sm:$0xff]   ;;  %vm1159_vm11 = vmor %vm602_vm3, %vm1158_vm10 }
  0x55   : > { %v2216_v27 = vpack.c.bf16 %v665_v23, %v665_v23  ;;  %v2218_v28 = vpack.c.bf16 %v666_v24, %v666_v24  ;;  %v1705_v29 = vpack.c.bf16 %v665_v23, %v663_v20  ;;  %v1913_v24 = vld [vmem:[%s2426_s5 + $0xb0] sm:$0xff]   ;;  %vm1066_vm3 = vcmask 1045508  }
  0x56   : > { %v2221_v30 = vshrl.u32 %v2212_v25, 16  ;;  %v2224_v31 = vshll.u32 %v2212_v25, 16  ;;  %v2227_v32 = vshll.u32 %v2214_v26, 16  ;;  %v968_v49 = vshrl.u32 %v2214_v26, 16  ;;  %vm1067_vm12 = vmor %vm601_vm1, %vm1066_vm3 }
  0x57   : > { %v2230_v33 = vshrl.u32 %v2216_v27, 16  ;;  %v2233_v34 = vshll.u32 %v2216_v27, 16  ;;  %v2236_v35 = vshll.u32 %v2218_v28, 16  ;;  %1767 = vmatmul.mubr.msk.bf16.vlgmr.msra.gmra.mxu1 %vm754_vm14, %v1705_v29  ;;  %v978_v57 = vshrl.u32 %v2218_v28, 16 }
  0x58   : > { %v693_v37 = vrot.slane %v2221_v30, 4  ;;  %v696_v38 = vrot.slane %v2224_v31, 5  ;;  %1783 = vmatpush3.bf16.msra.mxu1 %v1903_v22  ;;  %1790 = vmatprep.mubr.msk.bf16.mxu1 %vm1979_vm0, %v1978_v7  ;;  %v702_v39 = vrot.slane %v2227_v32, 5  ;;  %v964_v44 = vrot.slane %v2221_v30, 5 }
  0x59   : > { %v707_v40 = vrot.slane %v2230_v33, 4  ;;  %v710_v41 = vrot.slane %v2233_v34, 5  ;;  %1784 = vmatprep.subr.bf16.mxu1 %v1978_v7  ;;  %v716_v43 = vrot.slane %v2236_v35, 5  ;;  %v965_v45 = vrot.slane %v2224_v31, 6 }
  0x5a   : > { %v697_v42 = vor.u32 %v696_v38, %v693_v37  ;;  %v971_v50 = vrot.slane %v2227_v32, 6  ;;  %v974_v51 = vrot.slane %v2230_v33, 5  ;;  %v975_v54 = vrot.slane %v2233_v34, 6 }
  0x5b   : > { %v711_v47 = vor.u32 %v710_v41, %v707_v40  ;;  %v966_v53 = vor.u32 %v965_v45, %v964_v44  ;;  %v970_v56 = vrot.slane %v968_v49, 5  ;;  %v981_v62 = vrot.slane %v2236_v35, 6 }
  0x5c   : > { %v698_v52 = vrot.slane %v697_v42, 4  ;;  %1785 = vmatpush3.bf16.msra.mxu1 %v1905_v36  ;;  %v976_v61 = vor.u32 %v975_v54, %v974_v51  ;;  %v980_v2 = vrot.slane %v978_v57, 5  ;;  %v1160_v11 = vrot.slane %v2221_v30, 6  ;;  %v1910_v42 = vld [vmem:[%s2426_s5 + $0x98] sm:$0xff]  }
  0x5d   : > { %v712_v55 = vrot.slane %v711_v47, 4  ;;  %1786 = vmatprep.subr.bf16.mxu1 %v1978_v7  ;;  %v967_v60 = vrot.slane %v966_v53, 4  ;;  %v972_v1 = vor.u32 %v971_v50, %v970_v56  ;;  %v1161_v14 = vrot.slane %v2224_v31, 7  ;;  %v1916_v53 = vld [vmem:[%s2426_s5 + $0x80] sm:$0xff]  }
  0x5e   : > { %v703_v58 = vsel %vm2255_vm5, %v698_v52, %v702_v39  ;;  %v977_v5 = vrot.slane %v976_v61, 4  ;;  %v982_v8 = vor.u32 %v981_v62, %v980_v2  ;;  %v1168_v15 = vrot.slane %v2230_v33, 6 }
  0x5f   : > { %v717_v63 = vsel %vm2255_vm5, %v712_v55, %v716_v43  ;;  %v973_v6 = vsel %vm2272_vm6, %v967_v60, %v972_v1  ;;  %v1169_v16 = vrot.slane %v2233_v34, 7  ;;  %v1621_v17 = vrot.slane %v2212_v25, 9  ;;  %v1917_v43 = vld [vmem:[%s2426_s5 + $0xa0] sm:$0xff]  }
  0x60   : > { %v1609_v3 = vcombine.low %v703_v58, %v717_v63  ;;  %1787 = vmatpush3.bf16.msra.mxu1 %v1907_v48  ;;  %v983_v10 = vsel %vm2272_vm6, %v977_v5, %v982_v8  ;;  %v873_v18 = vrot.slane %v2214_v26, 5  ;;  %v1622_v20 = vrot.slane %v2216_v27, 9  ;;  %v1914_v48 = vld [vmem:[%s2426_s5 + $0x88] sm:$0xff]   ;;  %v1919_v58 = vld [vmem:[%s2426_s5 + $0xd0] sm:$0xff]  }
  0x61   : > { %1788 = vmatprep.subr.bf16.mxu1 %v1978_v7  ;;  %v1645_v12 = vcombine.low %v973_v6, %v983_v10  ;;  %v877_v21 = vrot.slane %v2218_v28, 5  ;;  %v1164_v22 = vrot.slane %v968_v49, 6  ;;  %v1165_v23 = vrot.slane %v2227_v32, 7  ;;  %v1908_v32 = vld [vmem:[%s2426_s5 + $0x40] sm:$0xff]  }
  0x62   : > { %1755 = vmatmul.mubr.msk.bf16.vlgmr.msra.gmra.mxu0 %vm754_vm14, %v1609_v3  ;;  %v1162_v29 = vor.u32 %v1161_v14, %v1160_v11  ;;  %v1170_v30 = vor.u32 %v1169_v16, %v1168_v15  ;;  %v1172_v31 = vrot.slane %v978_v57, 6  ;;  %v1173_v33 = vrot.slane %v2236_v35, 7  ;;  %v1915_v35 = vld [vmem:[%s2426_s5 + $0xa8] sm:$0xff]   ;;  %v1918_v57 = vld [vmem:[%s2426_s5 + $0xd8] sm:$0xff]  }
  0x63   : > { %1771 = vmatpush3.bf16.msra.mxu0 %v1902_v0  ;;  %1778 = vmatprep.mubr.msk.bf16.mxu0 %vm1979_vm0, %v1978_v7  ;;  %v874_v34 = vsel %vm870_vm9, %v1621_v17, %v873_v18  ;;  %v878_v36 = vsel %vm870_vm9, %v1622_v20, %v877_v21  ;;  %v1166_v38 = vor.u32 %v1165_v23, %v1164_v22  ;;  %v1651_v49 = vrot.slane %v2212_v25, 10  ;;  %v1921_v0 = vld [vmem:[%s2426_s5 + $0xc0] sm:$0xff]  }
  0x64   : > { %1772 = vmatprep.subr.bf16.mxu0 %v1978_v7  ;;  %1789 = vmatpush3.bf16.msra.mxu1 %v1909_v4  ;;  %v1163_v37 = vrot.slane %v1162_v29, 4  ;;  %v1171_v39 = vrot.slane %v1170_v30, 4  ;;  %v1174_v40 = vor.u32 %v1173_v33, %v1172_v31  ;;  %v1631_v41 = vcombine.low %v874_v34, %v878_v36 }
  0x65   : > { %1806 = vmatprep.subr.bf16.mxu1 %v1978_v7  ;;  %v1070_v50 = vrot.slane %v2214_v26, 6  ;;  %v1652_v51 = vrot.slane %v2216_v27, 10  ;;  %v1074_v52 = vrot.slane %v2218_v28, 6  ;;  %vm1258_vm1 = vcmask 1040384  }
  0x66   : > { %v1167_v44 = vsel %vm1159_vm11, %v1163_v37, %v1166_v38  ;;  %v1175_v45 = vsel %vm1159_vm11, %v1171_v39, %v1174_v40  ;;  %v1681_v60 = vrot.slane %v2212_v25, 11  ;;  %v1263_v61 = vrot.slane %v2214_v26, 7 }
  0x67   : > { %1773 = vmatpush3.bf16.msra.mxu0 %v1904_v9  ;;  %1791 = vmatmul.mubr.msk.bf16.vlgmr.msra.gmra.mxu1 %vm754_vm14, %v1645_v12  ;;  %v1675_v47 = vcombine.low %v1167_v44, %v1175_v45  ;;  %v1071_v54 = vsel %vm1067_vm12, %v1651_v49, %v1070_v50  ;;  %v1075_v55 = vsel %vm1067_vm12, %v1652_v51, %v1074_v52  ;;  %v1682_v62 = vrot.slane %v2216_v27, 11 }
  0x68   : > { %1774 = vmatprep.subr.bf16.mxu0 %v1978_v7  ;;  %1807 = vmatpush3.bf16.msra.mxu1 %v1911_v13  ;;  %v1661_v56 = vcombine.low %v1071_v54, %v1075_v55  ;;  %v1267_v63 = vrot.slane %v2218_v28, 7 }
  0x69   : > { %1808 = vmatprep.subr.bf16.mxu1 %v1978_v7  ;;  %1814 = vmatprep.mubr.msk.bf16.mxu1 %vm1979_vm0, %v1978_v7 }
  0x6b   : > { %1775 = vmatpush3.bf16.msra.mxu0 %v1906_v19 }
  0x6c   : > { %1776 = vmatprep.subr.bf16.mxu0 %v1978_v7  ;;  %1809 = vmatpush3.bf16.msra.mxu1 %v1913_v24 }
  0x6d   : > { %1810 = vmatprep.subr.bf16.mxu1 %v1978_v7 }
  0x6f   : > { %1777 = vmatpush3.bf16.msra.mxu0 %v1908_v32 }
  0x70   : > { %1794 = vmatprep.subr.bf16.mxu0 %v1978_v7  ;;  %1811 = vmatpush3.bf16.msra.mxu1 %v1915_v35 }
  0x71   : > { %1812 = vmatprep.subr.bf16.mxu1 %v1978_v7 }
  0x72   : > { %1779 = vmatmul.mubr.msk.bf16.vlgmr.msra.gmra.mxu0 %vm754_vm14, %v1631_v41 }
  0x73   : > { %1795 = vmatpush3.bf16.msra.mxu0 %v1910_v42  ;;  %1802 = vmatprep.mubr.msk.bf16.mxu0 %vm1979_vm0, %v1978_v7 }
  0x74   : > { %1796 = vmatprep.subr.bf16.mxu0 %v1978_v7  ;;  %1813 = vmatpush3.bf16.msra.mxu1 %v1917_v43 }
  0x77   : > { %1797 = vmatpush3.bf16.msra.mxu0 %v1912_v46  ;;  %1815 = vmatmul.mubr.msk.bf16.vlgmr.msra.gmra.mxu1 %vm754_vm14, %v1675_v47 }
  0x78   : > { %1798 = vmatprep.subr.bf16.mxu0 %v1978_v7 }
  0x7b   : > { %1799 = vmatpush3.bf16.msra.mxu0 %v1914_v48 }
  0x7c   : > { %1800 = vmatprep.subr.bf16.mxu0 %v1978_v7 }
  0x7f   : > { %1801 = vmatpush3.bf16.msra.mxu0 %v1916_v53 }
  0x80   : > { %1818 = vmatprep.subr.bf16.mxu0 %v1978_v7 }
  0x82   : > { %1803 = vmatmul.mubr.msk.bf16.vlgmr.msra.gmra.mxu0 %vm754_vm14, %v1661_v56 }
  0x83   : > { %1819 = vmatpush3.bf16.msra.mxu0 %v1918_v57  ;;  %1826 = vmatprep.mubr.msk.bf16.mxu0 %vm1979_vm0, %v1978_v7  ;;  %vm1260_vm0 = vmor %vm1258_vm1, %vm1259_vm13 }
  0x84   : > { %1820 = vmatprep.subr.bf16.mxu0 %v1978_v7  ;;  %v1264_v1 = vsel %vm1260_vm0, %v1681_v60, %v1263_v61  ;;  %v1268_v2 = vsel %vm1260_vm0, %v1682_v62, %v1267_v63 }
  0x85   : > { %v1691_v3 = vcombine.low %v1264_v1, %v1268_v2 }
  0x87   : > { %1821 = vmatpush3.bf16.msra.mxu0 %v1919_v58 }
  0x88   : > { %1822 = vmatprep.subr.bf16.mxu0 %v1978_v7 }
  0x8b   : > { %1823 = vmatpush3.bf16.msra.mxu0 %v1920_v59 }
  0x8c   : > { %1824 = vmatprep.subr.bf16.mxu0 %v1978_v7 }
  0x8f   : > { %1825 = vmatpush3.bf16.msra.mxu0 %v1921_v0 }
  0x92   : > { %1827 = vmatmul.mubr.msk.bf16.vlgmr.msra.gmra.mxu0 %vm754_vm14, %v1691_v3 }
 0x117   : > { %v861_v25 = vpop.f32.mrf.mxu1 }
 0x119   : > { %v1768_v26 = vpop.f32.mrf.mxu1 }
 0x11b   : > { %v864_v27 = vpop.f32.mrf.mxu1 }
 0x11d   : > { %v1769_v28 = vpop.f32.mrf.mxu1 }
 0x122   : > { %v792_v4 = vpop.f32.mrf.mxu0 }
 0x123   : > { %v862_v23 = vadd.f32 %v861_v25, %v792_v4 }
 0x124   : > { %v1756_v5 = vpop.f32.mrf.mxu0 }
 0x126   : > { %v795_v6 = vpop.f32.mrf.mxu0 }
 0x127   : > { %v1057_v8 = vpop.f32.mrf.mxu1  ;;  %v865_v29 = vadd.f32 %v864_v27, %v795_v6 }
 0x128   : > { %v1757_v9 = vpop.f32.mrf.mxu0 }
 0x129   : > { %v1792_v10 = vpop.f32.mrf.mxu1 }
 0x12b   : > { %v1060_v11 = vpop.f32.mrf.mxu1 }
 0x12d   : > { %v1793_v12 = vpop.f32.mrf.mxu1 }
 0x132   : > { %v952_v13 = vpop.f32.mrf.mxu0 }
 0x133   : > { %v959_v30 = vadd.f32 %v952_v13, %v862_v23 }
 0x134   : > { %v1780_v14 = vpop.f32.mrf.mxu0 }
 0x135   : > { %v1064_v33 = vadd.f32 %v1057_v8, %v959_v30 }
 0x136   : > { %v955_v15 = vpop.f32.mrf.mxu0 }
 0x137   : > { %v1249_v7 = vpop.f32.mrf.mxu1  ;;  %v960_v31 = vadd.f32 %v955_v15, %v865_v29 }
 0x138   : > { %v1781_v16 = vpop.f32.mrf.mxu0 }
 0x139   : > { %v1816_v17 = vpop.f32.mrf.mxu1  ;;  %v1065_v32 = vadd.f32 %v1060_v11, %v960_v31 }
 0x13b   : > { %v1252_v18 = vpop.f32.mrf.mxu1 }
 0x13d   : > { %v1817_v19 = vpop.f32.mrf.mxu1 }
 0x142   : > { %v1149_v20 = vpop.f32.mrf.mxu0 }
 0x143   : > { %v1156_v34 = vadd.f32 %v1149_v20, %v1064_v33 }
 0x144   : > { %v1804_v21 = vpop.f32.mrf.mxu0 }
 0x145   : > { %v1256_v37 = vadd.f32 %v1249_v7, %v1156_v34 }
 0x146   : > { %v1152_v22 = vpop.f32.mrf.mxu0 }
 0x147   : > { %v1157_v36 = vadd.f32 %v1152_v22, %v1065_v32 }
 0x148   : > { %v1805_v24 = vpop.f32.mrf.mxu0 }
 0x149   : > { %v1257_v39 = vadd.f32 %v1252_v18, %v1157_v36 }
 0x152   : > { %v1342_v35 = vpop.f32.mrf.mxu0 }
 0x153   : > { %v1349_v40 = vadd.f32 %v1342_v35, %v1256_v37 }
 0x154   : > { %v1828_v38 = vpop.f32.mrf.mxu0 }
 0x155   : > { %v1363_v44 = vmul.f32 %v1349_v40, %v1349_v40 }
 0x156   : > { %v1345_v41 = vpop.f32.mrf.mxu0 }
 0x157   : > { %v1350_v42 = vadd.f32 %v1345_v41, %v1257_v39 }
 0x158   : > { %v1829_v43 = vpop.f32.mrf.mxu0 }
 0x159   : > { %v1709_v45 = vpack.c.bf16 %v1350_v42, %v1349_v40  ;;  %v1355_v46 = vadd.f32 %v1350_v42, %v1349_v40  ;;  %v1364_v47 = vmul.f32 %v1350_v42, %v1350_v42 }
 0x15b   : > { %1710 = vst [vmem:[%s499_s10] sm:$0xff] %v1709_v45   ;;  %v1356_v48 = vrot.slane %v1355_v46, 4  ;;  %v1365_v49 = vadd.f32 %v1364_v47, %v1363_v44 }
 0x15d   : > { %v1357_v50 = vadd.f32 %v1356_v48, %v1355_v46  ;;  %v1366_v51 = vrot.slane %v1365_v49, 4 }
 0x15f   : > { %v1358_v52 = vrot.slane %v1357_v50, 2  ;;  %v1367_v53 = vadd.f32 %v1366_v51, %v1365_v49 }
 0x161   : > { %v1359_v54 = vadd.f32 %v1358_v52, %v1357_v50  ;;  %v1368_v55 = vrot.slane %v1367_v53, 2 }
 0x162   : > { %v1404_v61 = vld [vmem:[%s499_s10] sm:$0xf] (%p2121_p1)  ;;  %v1406_v62 = vld [vmem:[%s499_s10 + $0x4] sm:$0xf] (%p2121_p1) }
 0x163   : > { %v1360_v56 = vrot.slane %v1359_v54, 1  ;;  %v1369_v57 = vadd.f32 %v1368_v55, %v1367_v53  ;;  %1405 = vst [vmem:[%s1387_s6] sm:$0xf] (%p2121_p1), %v1404_v61  ;;  %1407 = vst [vmem:[%s1387_s6 + $0x8] sm:$0xf] (%p2121_p1), %v1406_v62 }
 0x165   : > { %v1361_v58 = vadd.f32 %v1360_v56, %v1359_v54  ;;  %v1370_v59 = vrot.slane %v1369_v57, 1  ;;  %1385 = sbr.rel (!%p2121_p1) target bundleno = 362 (0x16a), region = 171 }
 0x167   : > { %1362 = vst [vmem:[%s518_s18] sm:$0x1] %v1361_v58  ;;  %v1371_v60 = vadd.f32 %v1370_v59, %v1369_v57 }
 0x169   : > { %1372 = vst [vmem:[%s521_s11] sm:$0x1] %v1371_v60 }
 0x16a PF: > { %s2448_s11 = sld [smem:[#allocation7_spill]]  ;;  %s2453_s27 = smov %s1956_s28 }
 0x16b   : > { %s2449_s13 = sld [smem:[#allocation10_spill]]  ;;  %s2455_s29 = smov %s1964_s30 }
 0x16c   : > { %s2450_s22 = sld [smem:[#allocation9_spill]] }
 0x16d   : > { %s2451_s9 = sld [smem:[#allocation6_spill]] }
 0x16e   : > { %s2452_s10 = sld [smem:[#allocation8_spill]] }
 0x170   : > { %p16_p7 = scmp.ge.s32.totalorder %s2448_s11, 4  }
 0x171   : > { %s2454_s28 = smov %s2449_s13 }
 0x172   : > { %s2456_s30 = smov %s2450_s22  ;;  %18 = sbr.rel (!%p16_p7) target bundleno = 6 (0x6), region = 289 }

</bundles_post_ra>
